<compile_context>
chip_gen: v7x
topology: tpu7x:2x2x1
jax: 0.10.0
libtpu: 0.0.40
codegen_flags: <defaults>
</compile_context>

<pallas_src>
import functools

import jax
import jax.numpy as jnp
from jax.experimental import pallas as pl
from jax.experimental.pallas import tpu as pltpu

C = 4.41941738242e-05
LANE = 128
SUBLANE = 8


def _round_up(x, m):
    return ((x + m - 1) // m) * m


# --------------------- kernel A: exp / fbank matmul / log ---------------------
def _preprocess_kernel(s_ref, fbt_ref, f_ref, ps_ref, *, nfreq, nframes, tile_m):
    p = jnp.exp(s_ref[...]) - C
    m = jnp.dot(p, fbt_ref[...], preferred_element_type=jnp.float32)
    # padded (fake) frequency channels would be log(0); force them to log(1)=0.
    col = jax.lax.broadcasted_iota(jnp.int32, m.shape, 1)
    m = jnp.where(col < nfreq, m, 1.0)
    lm = jnp.log(m)
    f_ref[...] = lm
    # per-tile column partial sums over *real* frames only (for the mean)
    row = pl.program_id(0) * tile_m + jax.lax.broadcasted_iota(jnp.int32, m.shape, 0)
    colsum = jnp.sum(jnp.where(row < nframes, lm, 0.0), axis=0, keepdims=True)
    ps_ref[...] = jnp.broadcast_to(colsum, ps_ref.shape)


# ------------- kernel B: mean-sub + context window + full MLP, fused ----------
def _fused_mlp_kernel(mu_ref, fp_ref, fa_ref, fn_ref, w1_ref, b1_ref,
                      wh_ref, bh_ref, wo_ref, bo_ref, o_ref, *,
                      nctx, ctx_len, tile_m, ov, n_hidden, nframes,
                      max_unroll=4):
    i = pl.program_id(0)
    # (ov + tile_m + ov, NF_P) window: prev-overlap, main tile, next-overlap
    win = jnp.concatenate([fp_ref[...], fa_ref[...], fn_ref[...]], axis=0)
    rows = win.shape[0]
    # global frame index of every window row; out-of-range rows (boundary /
    # tail padding / clamped overlap blocks) become exact zeros after masking,
    # matching the reference's zero-padding of the *centered* features.
    g = i * tile_m - ov + jax.lax.broadcasted_iota(jnp.int32, (rows, 1), 0)
    valid = jnp.logical_and(g >= 0, g < nframes)
    win = jnp.where(valid, win - mu_ref[...], 0.0)

    # context-window stacking along the lane axis -> one deep-K matmul
    base = ov - ctx_len
    stacked = jnp.concatenate(
        [win[base + j: base + j + tile_m, :] for j in range(nctx)], axis=1)
    h = jnp.dot(stacked.astype(jnp.bfloat16), w1_ref[...],
                preferred_element_type=jnp.float32)
    h = jnp.maximum(h + b1_ref[...], 0.0)

    n_rest = n_hidden - 1
    if n_rest <= max_unroll:
        for l in range(n_rest):
            h = jnp.dot(h.astype(jnp.bfloat16), wh_ref[l],
                        preferred_element_type=jnp.float32)
            h = jnp.maximum(h + bh_ref[l], 0.0)
    else:
        # deep nets: bound vreg live ranges instead of fully unrolling
        def body(l, hc):
            hn = jnp.dot(hc.astype(jnp.bfloat16), wh_ref[l],
                         preferred_element_type=jnp.float32)
            return jnp.maximum(hn + bh_ref[l], 0.0)
        h = jax.lax.fori_loop(0, n_rest, body, h)

    o_ref[...] = (jnp.dot(h.astype(jnp.bfloat16), wo_ref[...],
                          preferred_element_type=jnp.float32) + bo_ref[...])


# ----------------------------------- Net --------------------------------------
class NetPallas:
    """Pallas/TPU replica of PhonemeRecognizer Net (BN=False, ReLU, downsample<0)."""

    def __init__(self, input_dim, output_dim, n_hidden, width, ctx_len, fbank,
                 key, tile_m=None):
        assert n_hidden >= 1
        # TODO(synk): n_hidden==0, downsample>=0 and BatchNorm branches of the
        # original Net are not implemented (spec defaults: BN=False, downsample=-1).
        nfreq, nbins = fbank.shape
        nctx = 2 * ctx_len + 1
        assert input_dim == nfreq * nctx

        self.ctx_len = ctx_len
        self.nctx = nctx
        self.nfreq = nfreq
        self.nbins = nbins
        self.width = width
        self.output_dim = output_dim
        self.n_hidden = n_hidden

        # padded dims: lanes (128) for feature/width/output dims, sublanes (8)
        # only for the spectrogram bin dim (no 4x inflated HBM read in kernel A)
        self.NB8 = _round_up(nbins, SUBLANE)
        self.NF_P = _round_up(nfreq, LANE)
        self.W_P = _round_up(width, LANE)
        self.NO_P = _round_up(output_dim, LANE)
        # overlap rows read from the neighbouring tiles (multiple of 8, >= ctx_len)
        self.ov = _round_up(max(ctx_len, 1), SUBLANE)

        # physical VMEM -> tile_m default (512 on 128MiB parts, 256 on v7x)
        try:
            self.phys_vmem = int(pltpu.get_tpu_info().vmem_capacity_bytes)
        except Exception:
            self.phys_vmem = 64 << 20
        if tile_m is None:
            tile_m = 512 if self.phys_vmem >= (96 << 20) else 256
        self.tile_target = _round_up(tile_m, SUBLANE)

        # pre-transposed filterbank (NB8, NF_P) -- no in-kernel transpose
        fbank = jnp.asarray(fbank, jnp.float32)
        self.fbank_t = (jnp.zeros((self.NB8, self.NF_P), jnp.float32)
                        .at[:nbins, :nfreq].set(fbank.T))
        self._fbank = fbank

        # ---- random weights (same init scheme as the reference check) --------
        keys = jax.random.split(key, 2 * (n_hidden + 1))

        def init(i, shape):
            return 0.1 * jax.random.normal(keys[i], shape, dtype=jnp.float32)

        ref_hidden = [(init(0, (input_dim, width)), init(1, (width,)))]
        for l in range(1, n_hidden):
            ref_hidden.append((init(2 * l, (width, width)), init(2 * l + 1, (width,))))
        Wo = init(2 * n_hidden, (width, output_dim))
        bo = init(2 * n_hidden + 1, (output_dim,))
        self.ref_params = (ref_hidden, (Wo, bo))   # unpadded, for reference check

        # ---- padded / stacked weights (bf16, VMEM-resident, single-buffered) -
        W1, b1 = ref_hidden[0]
        w1s = jnp.zeros((nctx, self.NF_P, self.W_P), jnp.float32)
        w1s = w1s.at[:, :nfreq, :width].set(W1.reshape(nctx, nfreq, width))
        self.W1s = w1s.reshape(nctx * self.NF_P, self.W_P).astype(jnp.bfloat16)
        self.b1p = jnp.zeros((1, self.W_P), jnp.float32).at[0, :width].set(b1)

        nh2 = max(n_hidden - 1, 1)
        whb = jnp.zeros((nh2, self.W_P, self.W_P), jnp.float32)
        bhb = jnp.zeros((nh2, 1, self.W_P), jnp.float32)
        for l in range(1, n_hidden):
            Wl, bl = ref_hidden[l]
            whb = whb.at[l - 1, :width, :width].set(Wl)
            bhb = bhb.at[l - 1, 0, :width].set(bl)
        self.Whb = whb.astype(jnp.bfloat16)
        self.Bhb = bhb

        self.Wob = (jnp.zeros((self.W_P, self.NO_P), jnp.float32)
                    .at[:width, :output_dim].set(Wo)).astype(jnp.bfloat16)
        self.bob = (jnp.zeros((1, self.NO_P), jnp.float32)
                    .at[0, :output_dim].set(bo))

        self._use_buffered = True
        self._forward = jax.jit(functools.partial(self._forward_impl,
                                                  use_buffered=True))

    # ------------------------------------------------------------------ sizing -
    def _pick_tile(self, nframes):
        ov = self.ov
        # keep >= 2 grid steps when frames allow it (feeds both v7x TensorCores)
        half = _round_up(pl.cdiv(nframes, 2), ov)
        tile = min(self.tile_target, max(half, ov))
        tile = max(_round_up(tile, ov), ov)
        assert tile % ov == 0 and ov >= self.ctx_len
        return tile

    def _vmem_limit(self, tile_m, ov):
        # weights: bf16, single-buffered; biases / mu / fbank: f32
        w = (self.W1s.size + self.Whb.size + self.Wob.size) * 2
        w += (self.b1p.size + self.Bhb.size + self.bob.size + self.NF_P
              + self.fbank_t.size) * 4
        # double-buffered streaming tiles (feats in, output out, two overlaps)
        act = 2 * (tile_m * (self.NF_P + self.NO_P) + 2 * ov * self.NF_P) * 4
        # in-kernel temporaries (stacked bf16 LHS, centered window, h buffers)
        tmp = (tile_m * self.nctx * self.NF_P * 2
               + (tile_m + 2 * ov) * self.NF_P * 4
               + 3 * tile_m * self.W_P * 4)
        needed = w + act + tmp
        cap = max(int(self.phys_vmem * 3 // 4), 32 << 20)
        # TODO(synk): if `needed` exceeds `cap` for very wide/deep nets, stream
        # Whb layer blocks over an extra grid axis instead of keeping all
        # hidden layers resident in VMEM.
        return int(min(max(needed * 2, 32 << 20), cap))

    # ----------------------------------------------------------------- forward -
    def _forward_impl(self, x, use_buffered):
        S2d = jnp.squeeze(x, axis=0).astype(jnp.float32)       # (nframes, nbins)
        nframes, nbins = S2d.shape
        assert nbins == self.nbins

        ov = self.ov
        tile_m = self._pick_tile(nframes)
        num_tiles = pl.cdiv(nframes, tile_m)
        nframes_pad = num_tiles * tile_m
        rpb = tile_m // ov                      # ov-row blocks per tile

        def spec(shape, imap):
            # constant-index blocks: single buffer (no wasted double-buffer VMEM)
            if use_buffered:
                return pl.BlockSpec(shape, imap, pipeline_mode=pl.Buffered(1))
            return pl.BlockSpec(shape, imap)

        cparams = pltpu.CompilerParams(
            dimension_semantics=("parallel",),
            vmem_limit_bytes=self._vmem_limit(tile_m, ov))

        # spectrogram kept at native bin width (rounded to 8 only)
        s_pad = (jnp.zeros((nframes_pad, self.NB8), jnp.float32)
                 .at[:nframes, :nbins].set(S2d))

        # ---- pass 1: frame-tiled preprocess + per-tile column partial sums ----
        feats_pad, psums = pl.pallas_call(
            functools.partial(_preprocess_kernel, nfreq=self.nfreq,
                              nframes=nframes, tile_m=tile_m),
            out_shape=(jax.ShapeDtypeStruct((nframes_pad, self.NF_P), jnp.float32),
                       jax.ShapeDtypeStruct((num_tiles, SUBLANE, self.NF_P),
                                            jnp.float32)),
            grid=(num_tiles,),
            in_specs=[pl.BlockSpec((tile_m, self.NB8), lambda i: (i, 0)),
                      spec((self.NB8, self.NF_P), lambda i: (0, 0))],
            out_specs=(pl.BlockSpec((tile_m, self.NF_P), lambda i: (i, 0)),
                       pl.BlockSpec((1, SUBLANE, self.NF_P), lambda i: (i, 0, 0))),
            compiler_params=cparams,
        )(s_pad, self.fbank_t)

        # tiny XLA reduction: per-frequency mean over real frames
        mu = jnp.sum(psums[:, 0, :], axis=0, keepdims=True) * (1.0 / nframes)

        # ---- pass 2: fused mean-sub + context window + MLP, frame-tiled -------
        out_pad = pl.pallas_call(
            functools.partial(_fused_mlp_kernel, nctx=self.nctx,
                              ctx_len=self.ctx_len, tile_m=tile_m, ov=ov,
                              n_hidden=self.n_hidden, nframes=nframes),
            out_shape=jax.ShapeDtypeStruct((nframes_pad, self.NO_P), jnp.float32),
            grid=(num_tiles,),
            in_specs=[
                spec((1, self.NF_P), lambda i: (0, 0)),                      # mu
                pl.BlockSpec((ov, self.NF_P),                                # prev overlap
                             lambda i: (jnp.maximum(i * rpb - 1, 0), 0)),
                pl.BlockSpec((tile_m, self.NF_P), lambda i: (i, 0)),         # main tile
                pl.BlockSpec((ov, self.NF_P),                                # next overlap
                             lambda i: (jnp.minimum((i + 1) * rpb,
                                                    num_tiles * rpb - 1), 0)),
                spec(self.W1s.shape, lambda i: (0, 0)),
                spec(self.b1p.shape, lambda i: (0, 0)),
                spec(self.Whb.shape, lambda i: (0, 0, 0)),
                spec(self.Bhb.shape, lambda i: (0, 0, 0)),
                spec(self.Wob.shape, lambda i: (0, 0)),
                spec(self.bob.shape, lambda i: (0, 0)),
            ],
            out_specs=pl.BlockSpec((tile_m, self.NO_P), lambda i: (i, 0)),
            compiler_params=cparams,
        )(mu, feats_pad, feats_pad, feats_pad,
          self.W1s, self.b1p, self.Whb, self.Bhb, self.Wob, self.bob)

        return out_pad[:nframes, :self.output_dim]

    def __call__(self, x):
        try:
            return self._forward(x)
        except Exception:
            if not self._use_buffered:
                raise
            # fallback: this jax version rejected pl.Buffered(1); rebuild with
            # default double-buffered weight blocks (correct, slightly more VMEM)
            self._use_buffered = False
            self._forward = jax.jit(functools.partial(self._forward_impl,
                                                      use_buffered=False))
            return self._forward(x)


# --------------------------- pure-JAX reference --------------------------------
def reference_forward(x, fbank, ctx_len, ref_params):
    hidden, (Wo, bo) = ref_params
    S2d = jnp.squeeze(x, axis=0)
    feats = jnp.exp(S2d) - C
    feats = jnp.dot(feats, fbank.T)
    feats = jnp.log(feats)
    feats = feats - jnp.mean(feats, axis=0, keepdims=True)
    nframes, nfreq = feats.shape
    nctx = 2 * ctx_len + 1
    z = jnp.zeros((ctx_len, nfreq), feats.dtype)
    padded = jnp.concatenate([z, feats, z], axis=0)
    stacked = jnp.concatenate([padded[i:i + nframes] for i in range(nctx)], axis=1)
    h = stacked
    for W, b in hidden:
        h = jnp.maximum(jnp.dot(h, W) + b, 0.0)
    return jnp.dot(h, Wo) + bo


# ----------------------------------- main ---------------------------------------
if __name__ == "__main__":
    key = jax.random.PRNGKey(0)
    k_s, k_fb, k_net = jax.random.split(key, 3)

    # small, self-consistent shapes (nframes deliberately not a tile multiple)
    nframes, nbins, nfreq = 19, 32, 8
    ctx_len = 2
    nctx = 2 * ctx_len + 1
    input_dim = nfreq * nctx        # 40
    width = 32
    n_hidden = 2
    output_dim = 16

    # synthetic mel-like filterbank (strictly positive so log() is valid)
    fbank = jax.random.uniform(k_fb, (nfreq, nbins),
                               minval=0.05, maxval=1.0, dtype=jnp.float32)

    # synthetic log-spectrogram input S, shape (1, nframes, nbins)
    x = 0.5 * jax.random.normal(k_s, (1, nframes, nbins), dtype=jnp.float32)

    net = NetPallas(input_dim, output_dim, n_hidden, width, ctx_len, fbank, k_net)
    y = jax.block_until_ready(net(x))
    assert y.shape == (nframes, output_dim), y.shape

    y_ref = jax.block_until_ready(
        reference_forward(x, fbank, ctx_len, net.ref_params))
    err = float(jnp.max(jnp.abs(y - y_ref)))
    assert err < 5e-2, f"max abs error vs reference: {err}"

    print("KERNEL_OK")
</pallas_src>

<mosaic_0001>
module attributes {stable_mosaic.version = 11 : i64} {
  func.func @_preprocess_kernel(%arg0: i32, %arg1: memref<16x32xf32, #tpu.memory_space<vmem>>, %arg2: memref<32x128xf32, #tpu.memory_space<vmem>>, %arg3: memref<16x128xf32, #tpu.memory_space<vmem>>, %arg4: memref<1x8x128xf32, #tpu.memory_space<vmem>>) attributes {dimension_semantics = [#tpu.dimension_semantics<parallel>], iteration_bounds = array<i64: 2>, scalar_prefetch = 0 : i64, scratch_operands = 0 : i64, tpu.core_type = #tpu.core_type<tc>, window_params = [{transform_indices = @transform_0, window_bounds = array<i64: 16, 32>}, {pipeline_mode = #tpu.pipeline_mode<synchronous>, transform_indices = @transform_1, window_bounds = array<i64: 32, 128>}, {transform_indices = @transform_2, window_bounds = array<i64: 16, 128>}, {transform_indices = @transform_3, window_bounds = array<i64: 1, 8, 128>}]} {
    %c0 = arith.constant 0 : index
    %c0_0 = arith.constant 0 : index
    %0 = vector.load %arg1[%c0, %c0_0] : memref<16x32xf32, #tpu.memory_space<vmem>>, vector<16x32xf32>
    %1 = math.exp %0 : vector<16x32xf32>
    %cst = arith.constant 4.41941738E-5 : f32
    %2 = vector.broadcast %cst : f32 to vector<16x32xf32>
    %3 = arith.subf %1, %2 : vector<16x32xf32>
    %c0_1 = arith.constant 0 : index
    %c0_2 = arith.constant 0 : index
    %4 = vector.load %arg2[%c0_1, %c0_2] : memref<32x128xf32, #tpu.memory_space<vmem>>, vector<32x128xf32>
    %cst_3 = arith.constant dense<0.000000e+00> : vector<16x128xf32>
    %5 = tpu.matmul %3, %4, %cst_3 {dimension_numbers = #tpu.dot_dimension_numbers<[1], [0], [0], [1], [0, 0, 1, 1], [], []>} : vector<16x32xf32>, vector<32x128xf32>, vector<16x128xf32> -> vector<16x128xf32>
    %6 = tpu.iota {dimensions = array<i32: 1>} : vector<16x128xi32>
    %c8_i32 = arith.constant 8 : i32
    %7 = vector.broadcast %c8_i32 : i32 to vector<16x128xi32>
    %8 = arith.cmpi slt, %6, %7 : vector<16x128xi32>
    %cst_4 = arith.constant 1.000000e+00 : f32
    %9 = vector.broadcast %cst_4 : f32 to vector<16x128xf32>
    %10 = arith.select %8, %5, %9 : vector<16x128xi1>, vector<16x128xf32>
    %11 = math.log %10 : vector<16x128xf32>
    %c0_5 = arith.constant 0 : index
    %c0_6 = arith.constant 0 : index
    %12 = vector.load %arg3[%c0_5, %c0_6] : memref<16x128xf32, #tpu.memory_space<vmem>>, vector<16x128xf32>
    tpu.vector_store %arg3[%c0_5, %c0_6], %11 {strides = array<i32>} : memref<16x128xf32, #tpu.memory_space<vmem>>, vector<16x128xf32>,
    %c16_i32 = arith.constant 16 : i32
    %13 = arith.muli %arg0, %c16_i32 : i32
    %14 = tpu.iota {dimensions = array<i32: 0>} : vector<16x128xi32>
    %15 = vector.broadcast %13 : i32 to vector<16x128xi32>
    %16 = arith.addi %15, %14 : vector<16x128xi32>
    %c19_i32 = arith.constant 19 : i32
    %17 = vector.broadcast %c19_i32 : i32 to vector<16x128xi32>
    %18 = arith.cmpi slt, %16, %17 : vector<16x128xi32>
    %cst_7 = arith.constant 0.000000e+00 : f32
    %19 = vector.broadcast %cst_7 : f32 to vector<16x128xf32>
    %20 = arith.select %18, %11, %19 : vector<16x128xi1>, vector<16x128xf32>
    %cst_8 = arith.constant dense<0.000000e+00> : vector<128xf32>
    %21 = vector.multi_reduction <add>, %20, %cst_8 [0] : vector<16x128xf32> to vector<128xf32>
    %22 = vector.shape_cast %21 : vector<128xf32> to vector<1x128xf32>
    %23 = vector.shape_cast %22 : vector<1x128xf32> to vector<1x1x128xf32>
    %24 = vector.broadcast %23 : vector<1x1x128xf32> to vector<1x8x128xf32>
    %c0_9 = arith.constant 0 : index
    %c0_10 = arith.constant 0 : index
    %c0_11 = arith.constant 0 : index
    %25 = vector.load %arg4[%c0_9, %c0_10, %c0_11] : memref<1x8x128xf32, #tpu.memory_space<vmem>>, vector<1x8x128xf32>
    tpu.vector_store %arg4[%c0_9, %c0_10, %c0_11], %24 {strides = array<i32>} : memref<1x8x128xf32, #tpu.memory_space<vmem>>, vector<1x8x128xf32>,
    return
  }
  func.func @transform_0(%arg0: i32) -> (i32, i32) {
    %c0_i32 = arith.constant 0 : i32
    %c0_i32_0 = arith.constant 0 : i32
    return %arg0, %c0_i32 : i32, i32
  }
  func.func @transform_1(%arg0: i32) -> (i32, i32) {
    %c0_i32 = arith.constant 0 : i32
    %c0_i32_0 = arith.constant 0 : i32
    %c0_i32_1 = arith.constant 0 : i32
    return %c0_i32, %c0_i32_0 : i32, i32
  }
  func.func @transform_2(%arg0: i32) -> (i32, i32) {
    %c0_i32 = arith.constant 0 : i32
    %c0_i32_0 = arith.constant 0 : i32
    return %arg0, %c0_i32 : i32, i32
  }
  func.func @transform_3(%arg0: i32) -> (i32, i32, i32) {
    %c0_i32 = arith.constant 0 : i32
    %c0_i32_0 = arith.constant 0 : i32
    %c0_i32_1 = arith.constant 0 : i32
    return %arg0, %c0_i32, %c0_i32_0 : i32, i32, i32
  }
}

module attributes {stable_mosaic.version = 11 : i64} {
  func.func @_fused_mlp_kernel(%arg0: i32, %arg1: memref<1x128xf32, #tpu.memory_space<vmem>>, %arg2: memref<8x128xf32, #tpu.memory_space<vmem>>, %arg3: memref<16x128xf32, #tpu.memory_space<vmem>>, %arg4: memref<8x128xf32, #tpu.memory_space<vmem>>, %arg5: memref<640x128xbf16, #tpu.memory_space<vmem>>, %arg6: memref<1x128xf32, #tpu.memory_space<vmem>>, %arg7: memref<1x128x128xbf16, #tpu.memory_space<vmem>>, %arg8: memref<1x1x128xf32, #tpu.memory_space<vmem>>, %arg9: memref<128x128xbf16, #tpu.memory_space<vmem>>, %arg10: memref<1x128xf32, #tpu.memory_space<vmem>>, %arg11: memref<16x128xf32, #tpu.memory_space<vmem>>) attributes {dimension_semantics = [#tpu.dimension_semantics<parallel>], iteration_bounds = array<i64: 2>, scalar_prefetch = 0 : i64, scratch_operands = 0 : i64, tpu.core_type = #tpu.core_type<tc>, window_params = [{pipeline_mode = #tpu.pipeline_mode<synchronous>, transform_indices = @transform_0, window_bounds = array<i64: 1, 128>}, {transform_indices = @transform_1, window_bounds = array<i64: 8, 128>}, {transform_indices = @transform_2, window_bounds = array<i64: 16, 128>}, {transform_indices = @transform_3, window_bounds = array<i64: 8, 128>}, {pipeline_mode = #tpu.pipeline_mode<synchronous>, transform_indices = @transform_4, window_bounds = array<i64: 640, 128>}, {pipeline_mode = #tpu.pipeline_mode<synchronous>, transform_indices = @transform_5, window_bounds = array<i64: 1, 128>}, {pipeline_mode = #tpu.pipeline_mode<synchronous>, transform_indices = @transform_6, window_bounds = array<i64: 1, 128, 128>}, {pipeline_mode = #tpu.pipeline_mode<synchronous>, transform_indices = @transform_7, window_bounds = array<i64: 1, 1, 128>}, {pipeline_mode = #tpu.pipeline_mode<synchronous>, transform_indices = @transform_8, window_bounds = array<i64: 128, 128>}, {pipeline_mode = #tpu.pipeline_mode<synchronous>, transform_indices = @transform_9, window_bounds = array<i64: 1, 128>}, {transform_indices = @transform_10, window_bounds = array<i64: 16, 128>}]} {
    %c0 = arith.constant 0 : index
    %c0_0 = arith.constant 0 : index
    %0 = vector.load %arg2[%c0, %c0_0] : memref<8x128xf32, #tpu.memory_space<vmem>>, vector<8x128xf32>
    %c0_1 = arith.constant 0 : index
    %c0_2 = arith.constant 0 : index
    %1 = vector.load %arg3[%c0_1, %c0_2] : memref<16x128xf32, #tpu.memory_space<vmem>>, vector<16x128xf32>
    %c0_3 = arith.constant 0 : index
    %c0_4 = arith.constant 0 : index
    %2 = vector.load %arg4[%c0_3, %c0_4] : memref<8x128xf32, #tpu.memory_space<vmem>>, vector<8x128xf32>
    %3 = tpu.concatenate %0, %1, %2 in 0 : vector<8x128xf32>, vector<16x128xf32>, vector<8x128xf32> -> vector<32x128xf32>
    %c16_i32 = arith.constant 16 : i32
    %4 = arith.muli %arg0, %c16_i32 : i32
    %c8_i32 = arith.constant 8 : i32
    %5 = arith.subi %4, %c8_i32 : i32
    %6 = tpu.iota {dimensions = array<i32: 0>} : vector<32x1xi32>
    %7 = vector.broadcast %5 : i32 to vector<32x1xi32>
    %8 = arith.addi %7, %6 : vector<32x1xi32>
    %c0_i32 = arith.constant 0 : i32
    %9 = vector.broadcast %c0_i32 : i32 to vector<32x1xi32>
    %10 = arith.cmpi sge, %8, %9 : vector<32x1xi32>
    %c19_i32 = arith.constant 19 : i32
    %11 = vector.broadcast %c19_i32 : i32 to vector<32x1xi32>
    %12 = arith.cmpi slt, %8, %11 : vector<32x1xi32>
    %13 = arith.andi %10, %12 : vector<32x1xi1>
    %c0_5 = arith.constant 0 : index
    %c0_6 = arith.constant 0 : index
    %14 = vector.load %arg1[%c0_5, %c0_6] : memref<1x128xf32, #tpu.memory_space<vmem>>, vector<1x128xf32>
    %15 = vector.broadcast %14 : vector<1x128xf32> to vector<32x128xf32>
    %16 = arith.subf %3, %15 : vector<32x128xf32>
    %cst = arith.constant 0.000000e+00 : f32
    %17 = vector.shape_cast %13 : vector<32x1xi1> to vector<32x1xi1>
    %18 = vector.broadcast %17 : vector<32x1xi1> to vector<32x128xi1>
    %19 = vector.broadcast %cst : f32 to vector<32x128xf32>
    %20 = arith.select %18, %16, %19 : vector<32x128xi1>, vector<32x128xf32>
    %21 = vector.extract_strided_slice %20 {offsets = [6, 0], sizes = [16, 128], strides = [1, 1]} : vector<32x128xf32> to vector<16x128xf32>
    %22 = vector.extract_strided_slice %20 {offsets = [7, 0], sizes = [16, 128], strides = [1, 1]} : vector<32x128xf32> to vector<16x128xf32>
    %23 = vector.extract_strided_slice %20 {offsets = [8, 0], sizes = [16, 128], strides = [1, 1]} : vector<32x128xf32> to vector<16x128xf32>
    %24 = vector.extract_strided_slice %20 {offsets = [9, 0], sizes = [16, 128], strides = [1, 1]} : vector<32x128xf32> to vector<16x128xf32>
    %25 = vector.extract_strided_slice %20 {offsets = [10, 0], sizes = [16, 128], strides = [1, 1]} : vector<32x128xf32> to vector<16x128xf32>
    %26 = tpu.concatenate %21, %22, %23, %24, %25 in 1 : vector<16x128xf32>, vector<16x128xf32>, vector<16x128xf32>, vector<16x128xf32>, vector<16x128xf32> -> vector<16x640xf32>
    %27 = arith.truncf %26 : vector<16x640xf32> to vector<16x640xbf16>
    %c0_7 = arith.constant 0 : index
    %c0_8 = arith.constant 0 : index
    %28 = vector.load %arg5[%c0_7, %c0_8] : memref<640x128xbf16, #tpu.memory_space<vmem>>, vector<640x128xbf16>
    %cst_9 = arith.constant dense<0.000000e+00> : vector<16x128xf32>
    %29 = tpu.matmul %27, %28, %cst_9 {dimension_numbers = #tpu.dot_dimension_numbers<[1], [0], [0], [1], [0, 0, 1, 1], [], []>} : vector<16x640xbf16>, vector<640x128xbf16>, vector<16x128xf32> -> vector<16x128xf32>
    %c0_10 = arith.constant 0 : index
    %c0_11 = arith.constant 0 : index
    %30 = vector.load %arg6[%c0_10, %c0_11] : memref<1x128xf32, #tpu.memory_space<vmem>>, vector<1x128xf32>
    %31 = vector.broadcast %30 : vector<1x128xf32> to vector<16x128xf32>
    %32 = arith.addf %29, %31 : vector<16x128xf32>
    %cst_12 = arith.constant 0.000000e+00 : f32
    %33 = vector.broadcast %cst_12 : f32 to vector<16x128xf32>
    %34 = arith.maximumf %32, %33 : vector<16x128xf32>
    %35 = arith.truncf %34 : vector<16x128xf32> to vector<16x128xbf16>
    %c0_13 = arith.constant 0 : index
    %c0_14 = arith.constant 0 : index
    %c0_15 = arith.constant 0 : index
    %36 = vector.load %arg7[%c0_13, %c0_14, %c0_15] : memref<1x128x128xbf16, #tpu.memory_space<vmem>>, vector<1x128x128xbf16>
    %37 = vector.shape_cast %36 : vector<1x128x128xbf16> to vector<128x128xbf16>
    %cst_16 = arith.constant dense<0.000000e+00> : vector<16x128xf32>
    %38 = tpu.matmul %35, %37, %cst_16 {dimension_numbers = #tpu.dot_dimension_numbers<[1], [0], [0], [1], [0, 0, 1, 1], [], []>} : vector<16x128xbf16>, vector<128x128xbf16>, vector<16x128xf32> -> vector<16x128xf32>
    %c0_17 = arith.constant 0 : index
    %c0_18 = arith.constant 0 : index
    %c0_19 = arith.constant 0 : index
    %39 = vector.load %arg8[%c0_17, %c0_18, %c0_19] : memref<1x1x128xf32, #tpu.memory_space<vmem>>, vector<1x1x128xf32>
    %40 = vector.shape_cast %39 : vector<1x1x128xf32> to vector<1x128xf32>
    %41 = vector.broadcast %40 : vector<1x128xf32> to vector<16x128xf32>
    %42 = arith.addf %38, %41 : vector<16x128xf32>
    %cst_20 = arith.constant 0.000000e+00 : f32
    %43 = vector.broadcast %cst_20 : f32 to vector<16x128xf32>
    %44 = arith.maximumf %42, %43 : vector<16x128xf32>
    %45 = arith.truncf %44 : vector<16x128xf32> to vector<16x128xbf16>
    %c0_21 = arith.constant 0 : index
    %c0_22 = arith.constant 0 : index
    %46 = vector.load %arg9[%c0_21, %c0_22] : memref<128x128xbf16, #tpu.memory_space<vmem>>, vector<128x128xbf16>
    %cst_23 = arith.constant dense<0.000000e+00> : vector<16x128xf32>
    %47 = tpu.matmul %45, %46, %cst_23 {dimension_numbers = #tpu.dot_dimension_numbers<[1], [0], [0], [1], [0, 0, 1, 1], [], []>} : vector<16x128xbf16>, vector<128x128xbf16>, vector<16x128xf32> -> vector<16x128xf32>
    %c0_24 = arith.constant 0 : index
    %c0_25 = arith.constant 0 : index
    %48 = vector.load %arg10[%c0_24, %c0_25] : memref<1x128xf32, #tpu.memory_space<vmem>>, vector<1x128xf32>
    %49 = vector.broadcast %48 : vector<1x128xf32> to vector<16x128xf32>
    %50 = arith.addf %47, %49 : vector<16x128xf32>
    %c0_26 = arith.constant 0 : index
    %c0_27 = arith.constant 0 : index
    %51 = vector.load %arg11[%c0_26, %c0_27] : memref<16x128xf32, #tpu.memory_space<vmem>>, vector<16x128xf32>
    tpu.vector_store %arg11[%c0_26, %c0_27], %50 {strides = array<i32>} : memref<16x128xf32, #tpu.memory_space<vmem>>, vector<16x128xf32>,
    return
  }
  func.func @transform_0(%arg0: i32) -> (i32, i32) {
    %c0_i32 = arith.constant 0 : i32
    %c0_i32_0 = arith.constant 0 : i32
    %c0_i32_1 = arith.constant 0 : i32
    return %c0_i32, %c0_i32_0 : i32, i32
  }
  func.func @transform_1(%arg0: i32) -> (i32, i32) {
    %c2_i32 = arith.constant 2 : i32
    %0 = arith.muli %arg0, %c2_i32 : i32
    %c1_i32 = arith.constant 1 : i32
    %1 = arith.subi %0, %c1_i32 : i32
    %c0_i32 = arith.constant 0 : i32
    %2 = arith.maxsi %1, %c0_i32 : i32
    %c0_i32_0 = arith.constant 0 : i32
    %c0_i32_1 = arith.constant 0 : i32
    return %2, %c0_i32_0 : i32, i32
  }
  func.func @transform_2(%arg0: i32) -> (i32, i32) {
    %c0_i32 = arith.constant 0 : i32
    %c0_i32_0 = arith.constant 0 : i32
    return %arg0, %c0_i32 : i32, i32
  }
  func.func @transform_3(%arg0: i32) -> (i32, i32) {
    %c1_i32 = arith.constant 1 : i32
    %0 = arith.addi %arg0, %c1_i32 : i32
    %c2_i32 = arith.constant 2 : i32
    %1 = arith.muli %0, %c2_i32 : i32
    %c3_i32 = arith.constant 3 : i32
    %2 = arith.minsi %1, %c3_i32 : i32
    %c0_i32 = arith.constant 0 : i32
    %c0_i32_0 = arith.constant 0 : i32
    return %2, %c0_i32 : i32, i32
  }
  func.func @transform_4(%arg0: i32) -> (i32, i32) {
    %c0_i32 = arith.constant 0 : i32
    %c0_i32_0 = arith.constant 0 : i32
    %c0_i32_1 = arith.constant 0 : i32
    return %c0_i32, %c0_i32_0 : i32, i32
  }
  func.func @transform_5(%arg0: i32) -> (i32, i32) {
    %c0_i32 = arith.constant 0 : i32
    %c0_i32_0 = arith.constant 0 : i32
    %c0_i32_1 = arith.constant 0 : i32
    return %c0_i32, %c0_i32_0 : i32, i32
  }
  func.func @transform_6(%arg0: i32) -> (i32, i32, i32) {
    %c0_i32 = arith.constant 0 : i32
    %c0_i32_0 = arith.constant 0 : i32
    %c0_i32_1 = arith.constant 0 : i32
    %c0_i32_2 = arith.constant 0 : i32
    return %c0_i32, %c0_i32_0, %c0_i32_1 : i32, i32, i32
  }
  func.func @transform_7(%arg0: i32) -> (i32, i32, i32) {
    %c0_i32 = arith.constant 0 : i32
    %c0_i32_0 = arith.constant 0 : i32
    %c0_i32_1 = arith.constant 0 : i32
    %c0_i32_2 = arith.constant 0 : i32
    return %c0_i32, %c0_i32_0, %c0_i32_1 : i32, i32, i32
  }
  func.func @transform_8(%arg0: i32) -> (i32, i32) {
    %c0_i32 = arith.constant 0 : i32
    %c0_i32_0 = arith.constant 0 : i32
    %c0_i32_1 = arith.constant 0 : i32
    return %c0_i32, %c0_i32_0 : i32, i32
  }
  func.func @transform_9(%arg0: i32) -> (i32, i32) {
    %c0_i32 = arith.constant 0 : i32
    %c0_i32_0 = arith.constant 0 : i32
    %c0_i32_1 = arith.constant 0 : i32
    return %c0_i32, %c0_i32_0 : i32, i32
  }
  func.func @transform_10(%arg0: i32) -> (i32, i32) {
    %c0_i32 = arith.constant 0 : i32
    %c0_i32_0 = arith.constant 0 : i32
    return %arg0, %c0_i32 : i32, i32
  }
}

module attributes {stable_mosaic.version = 11 : i64} {
  func.func @_fused_mlp_kernel(%arg0: i32, %arg1: memref<1x128xf32, #tpu.memory_space<vmem>>, %arg2: memref<8x128xf32, #tpu.memory_space<vmem>>, %arg3: memref<16x128xf32, #tpu.memory_space<vmem>>, %arg4: memref<8x128xf32, #tpu.memory_space<vmem>>, %arg5: memref<640x128xbf16, #tpu.memory_space<vmem>>, %arg6: memref<1x128xf32, #tpu.memory_space<vmem>>, %arg7: memref<1x128x128xbf16, #tpu.memory_space<vmem>>, %arg8: memref<1x1x128xf32, #tpu.memory_space<vmem>>, %arg9: memref<128x128xbf16, #tpu.memory_space<vmem>>, %arg10: memref<1x128xf32, #tpu.memory_space<vmem>>, %arg11: memref<16x128xf32, #tpu.memory_space<vmem>>) attributes {dimension_semantics = [#tpu.dimension_semantics<parallel>], iteration_bounds = array<i64: 2>, scalar_prefetch = 0 : i64, scratch_operands = 0 : i64, tpu.core_type = #tpu.core_type<tc>, window_params = [{pipeline_mode = #tpu.pipeline_mode<synchronous>, transform_indices = @transform_0, window_bounds = array<i64: 1, 128>}, {transform_indices = @transform_1, window_bounds = array<i64: 8, 128>}, {transform_indices = @transform_2, window_bounds = array<i64: 16, 128>}, {transform_indices = @transform_3, window_bounds = array<i64: 8, 128>}, {pipeline_mode = #tpu.pipeline_mode<synchronous>, transform_indices = @transform_4, window_bounds = array<i64: 640, 128>}, {pipeline_mode = #tpu.pipeline_mode<synchronous>, transform_indices = @transform_5, window_bounds = array<i64: 1, 128>}, {pipeline_mode = #tpu.pipeline_mode<synchronous>, transform_indices = @transform_6, window_bounds = array<i64: 1, 128, 128>}, {pipeline_mode = #tpu.pipeline_mode<synchronous>, transform_indices = @transform_7, window_bounds = array<i64: 1, 1, 128>}, {pipeline_mode = #tpu.pipeline_mode<synchronous>, transform_indices = @transform_8, window_bounds = array<i64: 128, 128>}, {pipeline_mode = #tpu.pipeline_mode<synchronous>, transform_indices = @transform_9, window_bounds = array<i64: 1, 128>}, {transform_indices = @transform_10, window_bounds = array<i64: 16, 128>}]} {
    %c0 = arith.constant 0 : index
    %c0_0 = arith.constant 0 : index
    %0 = vector.load %arg2[%c0, %c0_0] : memref<8x128xf32, #tpu.memory_space<vmem>>, vector<8x128xf32>
    %c0_1 = arith.constant 0 : index
    %c0_2 = arith.constant 0 : index
    %1 = vector.load %arg3[%c0_1, %c0_2] : memref<16x128xf32, #tpu.memory_space<vmem>>, vector<16x128xf32>
    %c0_3 = arith.constant 0 : index
    %c0_4 = arith.constant 0 : index
    %2 = vector.load %arg4[%c0_3, %c0_4] : memref<8x128xf32, #tpu.memory_space<vmem>>, vector<8x128xf32>
    %3 = tpu.concatenate %0, %1, %2 in 0 : vector<8x128xf32>, vector<16x128xf32>, vector<8x128xf32> -> vector<32x128xf32>
    %c16_i32 = arith.constant 16 : i32
    %4 = arith.muli %arg0, %c16_i32 : i32
    %c8_i32 = arith.constant 8 : i32
    %5 = arith.subi %4, %c8_i32 : i32
    %6 = tpu.iota {dimensions = array<i32: 0>} : vector<32x1xi32>
    %7 = vector.broadcast %5 : i32 to vector<32x1xi32>
    %8 = arith.addi %7, %6 : vector<32x1xi32>
    %c0_i32 = arith.constant 0 : i32
    %9 = vector.broadcast %c0_i32 : i32 to vector<32x1xi32>
    %10 = arith.cmpi sge, %8, %9 : vector<32x1xi32>
    %c19_i32 = arith.constant 19 : i32
    %11 = vector.broadcast %c19_i32 : i32 to vector<32x1xi32>
    %12 = arith.cmpi slt, %8, %11 : vector<32x1xi32>
    %13 = arith.andi %10, %12 : vector<32x1xi1>
    %c0_5 = arith.constant 0 : index
    %c0_6 = arith.constant 0 : index
    %14 = vector.load %arg1[%c0_5, %c0_6] : memref<1x128xf32, #tpu.memory_space<vmem>>, vector<1x128xf32>
    %15 = vector.broadcast %14 : vector<1x128xf32> to vector<32x128xf32>
    %16 = arith.subf %3, %15 : vector<32x128xf32>
    %cst = arith.constant 0.000000e+00 : f32
    %17 = vector.shape_cast %13 : vector<32x1xi1> to vector<32x1xi1>
    %18 = vector.broadcast %17 : vector<32x1xi1> to vector<32x128xi1>
    %19 = vector.broadcast %cst : f32 to vector<32x128xf32>
    %20 = arith.select %18, %16, %19 : vector<32x128xi1>, vector<32x128xf32>
    %21 = vector.extract_strided_slice %20 {offsets = [6, 0], sizes = [16, 128], strides = [1, 1]} : vector<32x128xf32> to vector<16x128xf32>
    %22 = vector.extract_strided_slice %20 {offsets = [7, 0], sizes = [16, 128], strides = [1, 1]} : vector<32x128xf32> to vector<16x128xf32>
    %23 = vector.extract_strided_slice %20 {offsets = [8, 0], sizes = [16, 128], strides = [1, 1]} : vector<32x128xf32> to vector<16x128xf32>
    %24 = vector.extract_strided_slice %20 {offsets = [9, 0], sizes = [16, 128], strides = [1, 1]} : vector<32x128xf32> to vector<16x128xf32>
    %25 = vector.extract_strided_slice %20 {offsets = [10, 0], sizes = [16, 128], strides = [1, 1]} : vector<32x128xf32> to vector<16x128xf32>
    %26 = tpu.concatenate %21, %22, %23, %24, %25 in 1 : vector<16x128xf32>, vector<16x128xf32>, vector<16x128xf32>, vector<16x128xf32>, vector<16x128xf32> -> vector<16x640xf32>
    %27 = arith.truncf %26 : vector<16x640xf32> to vector<16x640xbf16>
    %c0_7 = arith.constant 0 : index
    %c0_8 = arith.constant 0 : index
    %28 = vector.load %arg5[%c0_7, %c0_8] : memref<640x128xbf16, #tpu.memory_space<vmem>>, vector<640x128xbf16>
    %cst_9 = arith.constant dense<0.000000e+00> : vector<16x128xf32>
    %29 = tpu.matmul %27, %28, %cst_9 {dimension_numbers = #tpu.dot_dimension_numbers<[1], [0], [0], [1], [0, 0, 1, 1], [], []>} : vector<16x640xbf16>, vector<640x128xbf16>, vector<16x128xf32> -> vector<16x128xf32>
    %c0_10 = arith.constant 0 : index
    %c0_11 = arith.constant 0 : index
    %30 = vector.load %arg6[%c0_10, %c0_11] : memref<1x128xf32, #tpu.memory_space<vmem>>, vector<1x128xf32>
    %31 = vector.broadcast %30 : vector<1x128xf32> to vector<16x128xf32>
    %32 = arith.addf %29, %31 : vector<16x128xf32>
    %cst_12 = arith.constant 0.000000e+00 : f32
    %33 = vector.broadcast %cst_12 : f32 to vector<16x128xf32>
    %34 = arith.maximumf %32, %33 : vector<16x128xf32>
    %35 = arith.truncf %34 : vector<16x128xf32> to vector<16x128xbf16>
    %c0_13 = arith.constant 0 : index
    %c0_14 = arith.constant 0 : index
    %c0_15 = arith.constant 0 : index
    %36 = vector.load %arg7[%c0_13, %c0_14, %c0_15] : memref<1x128x128xbf16, #tpu.memory_space<vmem>>, vector<1x128x128xbf16>
    %37 = vector.shape_cast %36 : vector<1x128x128xbf16> to vector<128x128xbf16>
    %cst_16 = arith.constant dense<0.000000e+00> : vector<16x128xf32>
    %38 = tpu.matmul %35, %37, %cst_16 {dimension_numbers = #tpu.dot_dimension_numbers<[1], [0], [0], [1], [0, 0, 1, 1], [], []>} : vector<16x128xbf16>, vector<128x128xbf16>, vector<16x128xf32> -> vector<16x128xf32>
    %c0_17 = arith.constant 0 : index
    %c0_18 = arith.constant 0 : index
    %c0_19 = arith.constant 0 : index
    %39 = vector.load %arg8[%c0_17, %c0_18, %c0_19] : memref<1x1x128xf32, #tpu.memory_space<vmem>>, vector<1x1x128xf32>
    %40 = vector.shape_cast %39 : vector<1x1x128xf32> to vector<1x128xf32>
    %41 = vector.broadcast %40 : vector<1x128xf32> to vector<16x128xf32>
    %42 = arith.addf %38, %41 : vector<16x128xf32>
    %cst_20 = arith.constant 0.000000e+00 : f32
    %43 = vector.broadcast %cst_20 : f32 to vector<16x128xf32>
    %44 = arith.maximumf %42, %43 : vector<16x128xf32>
    %45 = arith.truncf %44 : vector<16x128xf32> to vector<16x128xbf16>
    %c0_21 = arith.constant 0 : index
    %c0_22 = arith.constant 0 : index
    %46 = vector.load %arg9[%c0_21, %c0_22] : memref<128x128xbf16, #tpu.memory_space<vmem>>, vector<128x128xbf16>
    %cst_23 = arith.constant dense<0.000000e+00> : vector<16x128xf32>
    %47 = tpu.matmul %45, %46, %cst_23 {dimension_numbers = #tpu.dot_dimension_numbers<[1], [0], [0], [1], [0, 0, 1, 1], [], []>} : vector<16x128xbf16>, vector<128x128xbf16>, vector<16x128xf32> -> vector<16x128xf32>
    %c0_24 = arith.constant 0 : index
    %c0_25 = arith.constant 0 : index
    %48 = vector.load %arg10[%c0_24, %c0_25] : memref<1x128xf32, #tpu.memory_space<vmem>>, vector<1x128xf32>
    %49 = vector.broadcast %48 : vector<1x128xf32> to vector<16x128xf32>
    %50 = arith.addf %47, %49 : vector<16x128xf32>
    %c0_26 = arith.constant 0 : index
    %c0_27 = arith.constant 0 : index
    %51 = vector.load %arg11[%c0_26, %c0_27] : memref<16x128xf32, #tpu.memory_space<vmem>>, vector<16x128xf32>
    tpu.vector_store %arg11[%c0_26, %c0_27], %50 {strides = array<i32>} : memref<16x128xf32, #tpu.memory_space<vmem>>, vector<16x128xf32>,
    return
  }
  func.func @transform_0(%arg0: i32) -> (i32, i32) {
    %c0_i32 = arith.constant 0 : i32
    %c0_i32_0 = arith.constant 0 : i32
    %c0_i32_1 = arith.constant 0 : i32
    return %c0_i32, %c0_i32_0 : i32, i32
  }
  func.func @transform_1(%arg0: i32) -> (i32, i32) {
    %c2_i32 = arith.constant 2 : i32
    %0 = arith.muli %arg0, %c2_i32 : i32
    %c1_i32 = arith.constant 1 : i32
    %1 = arith.subi %0, %c1_i32 : i32
    %c0_i32 = arith.constant 0 : i32
    %2 = arith.maxsi %1, %c0_i32 : i32
    %c0_i32_0 = arith.constant 0 : i32
    %c0_i32_1 = arith.constant 0 : i32
    return %2, %c0_i32_0 : i32, i32
  }
  func.func @transform_2(%arg0: i32) -> (i32, i32) {
    %c0_i32 = arith.constant 0 : i32
    %c0_i32_0 = arith.constant 0 : i32
    return %arg0, %c0_i32 : i32, i32
  }
  func.func @transform_3(%arg0: i32) -> (i32, i32) {
    %c1_i32 = arith.constant 1 : i32
    %0 = arith.addi %arg0, %c1_i32 : i32
    %c2_i32 = arith.constant 2 : i32
    %1 = arith.muli %0, %c2_i32 : i32
    %c3_i32 = arith.constant 3 : i32
    %2 = arith.minsi %1, %c3_i32 : i32
    %c0_i32 = arith.constant 0 : i32
    %c0_i32_0 = arith.constant 0 : i32
    return %2, %c0_i32 : i32, i32
  }
  func.func @transform_4(%arg0: i32) -> (i32, i32) {
    %c0_i32 = arith.constant 0 : i32
    %c0_i32_0 = arith.constant 0 : i32
    %c0_i32_1 = arith.constant 0 : i32
    return %c0_i32, %c0_i32_0 : i32, i32
  }
  func.func @transform_5(%arg0: i32) -> (i32, i32) {
    %c0_i32 = arith.constant 0 : i32
    %c0_i32_0 = arith.constant 0 : i32
    %c0_i32_1 = arith.constant 0 : i32
    return %c0_i32, %c0_i32_0 : i32, i32
  }
  func.func @transform_6(%arg0: i32) -> (i32, i32, i32) {
    %c0_i32 = arith.constant 0 : i32
    %c0_i32_0 = arith.constant 0 : i32
    %c0_i32_1 = arith.constant 0 : i32
    %c0_i32_2 = arith.constant 0 : i32
    return %c0_i32, %c0_i32_0, %c0_i32_1 : i32, i32, i32
  }
  func.func @transform_7(%arg0: i32) -> (i32, i32, i32) {
    %c0_i32 = arith.constant 0 : i32
    %c0_i32_0 = arith.constant 0 : i32
    %c0_i32_1 = arith.constant 0 : i32
    %c0_i32_2 = arith.constant 0 : i32
    return %c0_i32, %c0_i32_0, %c0_i32_1 : i32, i32, i32
  }
  func.func @transform_8(%arg0: i32) -> (i32, i32) {
    %c0_i32 = arith.constant 0 : i32
    %c0_i32_0 = arith.constant 0 : i32
    %c0_i32_1 = arith.constant 0 : i32
    return %c0_i32, %c0_i32_0 : i32, i32
  }
  func.func @transform_9(%arg0: i32) -> (i32, i32) {
    %c0_i32 = arith.constant 0 : i32
    %c0_i32_0 = arith.constant 0 : i32
    %c0_i32_1 = arith.constant 0 : i32
    return %c0_i32, %c0_i32_0 : i32, i32
  }
  func.func @transform_10(%arg0: i32) -> (i32, i32) {
    %c0_i32 = arith.constant 0 : i32
    %c0_i32_0 = arith.constant 0 : i32
    return %arg0, %c0_i32 : i32, i32
  }
}

module attributes {stable_mosaic.version = 11 : i64} {
  func.func @_preprocess_kernel(%arg0: i32, %arg1: memref<16x32xf32, #tpu.memory_space<vmem>>, %arg2: memref<32x128xf32, #tpu.memory_space<vmem>>, %arg3: memref<16x128xf32, #tpu.memory_space<vmem>>, %arg4: memref<1x8x128xf32, #tpu.memory_space<vmem>>) attributes {dimension_semantics = [#tpu.dimension_semantics<parallel>], iteration_bounds = array<i64: 2>, scalar_prefetch = 0 : i64, scratch_operands = 0 : i64, tpu.core_type = #tpu.core_type<tc>, window_params = [{transform_indices = @transform_0, window_bounds = array<i64: 16, 32>}, {pipeline_mode = #tpu.pipeline_mode<synchronous>, transform_indices = @transform_1, window_bounds = array<i64: 32, 128>}, {transform_indices = @transform_2, window_bounds = array<i64: 16, 128>}, {transform_indices = @transform_3, window_bounds = array<i64: 1, 8, 128>}]} {
    %c0 = arith.constant 0 : index
    %c0_0 = arith.constant 0 : index
    %0 = vector.load %arg1[%c0, %c0_0] : memref<16x32xf32, #tpu.memory_space<vmem>>, vector<16x32xf32>
    %1 = math.exp %0 : vector<16x32xf32>
    %cst = arith.constant 4.41941738E-5 : f32
    %2 = vector.broadcast %cst : f32 to vector<16x32xf32>
    %3 = arith.subf %1, %2 : vector<16x32xf32>
    %c0_1 = arith.constant 0 : index
    %c0_2 = arith.constant 0 : index
    %4 = vector.load %arg2[%c0_1, %c0_2] : memref<32x128xf32, #tpu.memory_space<vmem>>, vector<32x128xf32>
    %cst_3 = arith.constant dense<0.000000e+00> : vector<16x128xf32>
    %5 = tpu.matmul %3, %4, %cst_3 {dimension_numbers = #tpu.dot_dimension_numbers<[1], [0], [0], [1], [0, 0, 1, 1], [], []>} : vector<16x32xf32>, vector<32x128xf32>, vector<16x128xf32> -> vector<16x128xf32>
    %6 = tpu.iota {dimensions = array<i32: 1>} : vector<16x128xi32>
    %c8_i32 = arith.constant 8 : i32
    %7 = vector.broadcast %c8_i32 : i32 to vector<16x128xi32>
    %8 = arith.cmpi slt, %6, %7 : vector<16x128xi32>
    %cst_4 = arith.constant 1.000000e+00 : f32
    %9 = vector.broadcast %cst_4 : f32 to vector<16x128xf32>
    %10 = arith.select %8, %5, %9 : vector<16x128xi1>, vector<16x128xf32>
    %11 = math.log %10 : vector<16x128xf32>
    %c0_5 = arith.constant 0 : index
    %c0_6 = arith.constant 0 : index
    %12 = vector.load %arg3[%c0_5, %c0_6] : memref<16x128xf32, #tpu.memory_space<vmem>>, vector<16x128xf32>
    tpu.vector_store %arg3[%c0_5, %c0_6], %11 {strides = array<i32>} : memref<16x128xf32, #tpu.memory_space<vmem>>, vector<16x128xf32>,
    %c16_i32 = arith.constant 16 : i32
    %13 = arith.muli %arg0, %c16_i32 : i32
    %14 = tpu.iota {dimensions = array<i32: 0>} : vector<16x128xi32>
    %15 = vector.broadcast %13 : i32 to vector<16x128xi32>
    %16 = arith.addi %15, %14 : vector<16x128xi32>
    %c19_i32 = arith.constant 19 : i32
    %17 = vector.broadcast %c19_i32 : i32 to vector<16x128xi32>
    %18 = arith.cmpi slt, %16, %17 : vector<16x128xi32>
    %cst_7 = arith.constant 0.000000e+00 : f32
    %19 = vector.broadcast %cst_7 : f32 to vector<16x128xf32>
    %20 = arith.select %18, %11, %19 : vector<16x128xi1>, vector<16x128xf32>
    %cst_8 = arith.constant dense<0.000000e+00> : vector<128xf32>
    %21 = vector.multi_reduction <add>, %20, %cst_8 [0] : vector<16x128xf32> to vector<128xf32>
    %22 = vector.shape_cast %21 : vector<128xf32> to vector<1x128xf32>
    %23 = vector.shape_cast %22 : vector<1x128xf32> to vector<1x1x128xf32>
    %24 = vector.broadcast %23 : vector<1x1x128xf32> to vector<1x8x128xf32>
    %c0_9 = arith.constant 0 : index
    %c0_10 = arith.constant 0 : index
    %c0_11 = arith.constant 0 : index
    %25 = vector.load %arg4[%c0_9, %c0_10, %c0_11] : memref<1x8x128xf32, #tpu.memory_space<vmem>>, vector<1x8x128xf32>
    tpu.vector_store %arg4[%c0_9, %c0_10, %c0_11], %24 {strides = array<i32>} : memref<1x8x128xf32, #tpu.memory_space<vmem>>, vector<1x8x128xf32>,
    return
  }
  func.func @transform_0(%arg0: i32) -> (i32, i32) {
    %c0_i32 = arith.constant 0 : i32
    %c0_i32_0 = arith.constant 0 : i32
    return %arg0, %c0_i32 : i32, i32
  }
  func.func @transform_1(%arg0: i32) -> (i32, i32) {
    %c0_i32 = arith.constant 0 : i32
    %c0_i32_0 = arith.constant 0 : i32
    %c0_i32_1 = arith.constant 0 : i32
    return %c0_i32, %c0_i32_0 : i32, i32
  }
  func.func @transform_2(%arg0: i32) -> (i32, i32) {
    %c0_i32 = arith.constant 0 : i32
    %c0_i32_0 = arith.constant 0 : i32
    return %arg0, %c0_i32 : i32, i32
  }
  func.func @transform_3(%arg0: i32) -> (i32, i32, i32) {
    %c0_i32 = arith.constant 0 : i32
    %c0_i32_0 = arith.constant 0 : i32
    %c0_i32_1 = arith.constant 0 : i32
    return %arg0, %c0_i32, %c0_i32_0 : i32, i32, i32
  }
}

</mosaic_0001>

<bundles_post_ra>
// kernel: _forward_impl.2
= control target key start
LH: loop header
LB: loop body
LE: loop exit
PB: predicated region body
PF: predicated region fallthrough
CT: control target
= control target key end

     0   :  { %s482_s12 = smov 0   ;;  %s527_s0 = inlined_call_operand.vmem [shape: f32[32,32], index: 0, kind: input, shape index: {}]   ;;  %s528_s1 = inlined_call_operand.vmem [shape: f32[32,128], index: 1, kind: input, shape index: {}]   ;;  %s529_s2 = inlined_call_operand.vmem [shape: f32[32,128], index: 2, kind: output, shape index: {0}]   ;;  %s530_s3 = inlined_call_operand.vmem [shape: f32[2,8,128], index: 3, kind: output, shape index: {1}]  }
   0x1 LB: > { %s488_s13 = sadd.s32 4294967295, %s460_s12   ;;  %p400_p0 = scmp.ge.s32.totalorder %s460_s12, 1  ;;  %s460_s12 = sphi %s482_s12, %s14_s12  }
   0x2   : > { %p141_p1 = scmp.lt.s32.totalorder %s460_s12, 3 }
   0x4   : > { %p142_p2 = pnand %p400_p0, %p141_p1 }
   0x5   : > { %v193_v0 = vld [vmem:[%s528_s1] sm:$0xff] (!%p142_p2)  ;;  %v194_v1 = vld [vmem:[%s528_s1 + $0x8] sm:$0xff] (!%p142_p2)  ;;  %v195_v2 = vld [vmem:[%s528_s1 + $0x10] sm:$0xff] (!%p142_p2)  ;;  %s401_s20 = sshll.u32 (!%p142_p2), %s488_s13, 1  ;;  %vm197_vm0 = vcmask (!%p142_p2), 261120   ;;  %v279_v14 = vlaneseq (!%p142_p2)  ;;  %s410_s27 = sshll.u32 (!%p142_p2), %s488_s13, 4 }
   0x6   : > { %145 = sbr.rel (%p142_p2) target bundleno = 276 (0x114), region = 28  ;;  %v430_v3 = vpack.c.bf16 (!%p142_p2), %v194_v1, %v193_v0  ;;  %v196_v4 = vld [vmem:[%s528_s1 + $0x18] sm:$0xff] (!%p142_p2)  ;;  %p170_p3 = scmp.lt.s32.totalorder (!%p142_p2), %s401_s20, 3  ;;  %v294_v22 = vstv (!%p142_p2), %s410_s27 }
   0x7   : > { %v434_v5 = vpack.c.bf16 (!%p142_p2), %v196_v4, %v195_v2  ;;  %v280_v15 = vand.u32 (!%p142_p2), 127, %v279_v14  ;;  %v292_v17 = vshrl.u32 (!%p142_p2), %v279_v14, 7  ;;  %p181_p4 = scmp.lt.s32.totalorder (!%p142_p2), %s488_s13, 1 }
   0x8   : > { %431 = vmatprep.subr.bf16.mxu0 (!%p142_p2), %v430_v3 }
   0x9   : > { %433 = vmatpush3.bf16.msra.mxu0 (!%p142_p2), %v430_v3  ;;  %vm281_vm1 = vcmp.lt.s32.totalorder (!%p142_p2), %v280_v15, 8  ;;  %v293_v21 = vadd.s32 (!%p142_p2), 8, %v292_v17  ;;  %v295_v24 = vadd.s32 (!%p142_p2), %v294_v22, %v292_v17 }
   0xa   : > { %435 = vmatprep.subr.bf16.mxu0 (!%p142_p2), %v434_v5 }
   0xb   : > { %v296_v23 = vadd.s32 (!%p142_p2), %v294_v22, %v293_v21  ;;  %vm297_vm3 = vcmp.lt.s32.totalorder (!%p142_p2), %v295_v24, 19 }
   0xd   : > { %s532_s20 = smov (!%p170_p3, %s401_s20), 3  ;;  %437 = vmatpush3.bf16.msra.mxu0 %v434_v5  ;;  %vm298_vm2 = vcmp.lt.s32.totalorder %v296_v23, 19  ;;  %s534_s13 = smov (!%p181_p4, %s488_s13), 1 }
   0xe   : > { %s402_s23 = sshll.u32 %s532_s20, 3  ;;  %s405_s4 = sshll.u32 %s534_s13, 3 }
   0xf   : > { %s173_s26 = scalar_lea.vmem %s527_s0, %s402_s23  ;;  %s179_s30 = scalar_lea.vmem %s529_s2, %s402_s23 }
  0x10   : > { %v185_v6 = vld [vmem:[%s173_s26] sm:$0xff]  ;;  %v186_v7 = vld [vmem:[%s173_s26 + $0x8] sm:$0xff]  ;;  %s184_s7 = scalar_lea.vmem %s530_s3, %s405_s4 }
  0x11   : > { %v187_v8 = vmul.f32 1.442695, %v185_v6  ;;  %v189_v9 = vmul.f32 1.442695, %v186_v7 }
  0x13   : > { %446 = vpow2.f32 %v187_v8 }
  0x14   : > { %448 = vpow2.f32 %v189_v9 }
  0x1d   : > { %v447_v10 = vpop.eup %446 }
  0x1e   : > { %v449_v11 = vpop.eup %448  ;;  %v406_v12 = vadd.f32 -4.4194174e-05, %v447_v10 }
  0x1f   : > { %v407_v13 = vadd.f32 -4.4194174e-05, %v449_v11 }
  0x20   : > { %427 = vmatprep.mubr.msk.f32.mxu0 %vm197_vm0, %v406_v12 }
  0x21   : > { %428 = vmatmul.mubr.msk.f32.vlgmr.msra.gmra.mrb[0].mxu0 %vm197_vm0, %v407_v13 }
  0xf4   : > { %v429_v16 = vpop.f32.mrb[0].mxu0 }
  0xf5   : > { %v283_v18 = vsel %vm281_vm1, %v429_v16, 1.0  ;;  %v270_v19 = vpop.f32.mrb[1].mxu0 }
  0xf6   : > { %450 = vlog2.f32 %v283_v18  ;;  %v282_v20 = vsel %vm281_vm1, %v270_v19, 1.0 }
  0xf7   : > { %452 = vlog2.f32 %v282_v20 }
 0x100   : > { %v451_v25 = vpop.eup %450 }
 0x101   : > { %v453_v26 = vpop.eup %452  ;;  %v287_v27 = vmul.f32 0.6931472, %v451_v25 }
 0x102   : > { %v285_v28 = vmul.f32 0.6931472, %v453_v26 }
 0x103   : > { %v300_v29 = vsel %vm298_vm2, %v287_v27, 0.0  ;;  %289 = vst [vmem:[%s179_s30 + $0x8] sm:$0xff] %v287_v27 }
 0x104   : > { %288 = vst [vmem:[%s179_s30] sm:$0xff] %v285_v28  ;;  %v299_v30 = vsel %vm297_vm3, %v285_v28, 0.0 }
 0x105   : > { %v301_v31 = vadd.f32 %v300_v29, %v299_v30 }
 0x107   : > { %v302_v32 = vrot.slane %v301_v31, 4 }
 0x109   : > { %v303_v33 = vadd.f32 %v302_v32, %v301_v31 }
 0x10b   : > { %v304_v34 = vrot.slane %v303_v33, 2 }
 0x10d   : > { %v305_v35 = vadd.f32 %v304_v34, %v303_v33 }
 0x10f   : > { %v306_v36 = vrot.slane %v305_v35, 1 }
 0x111   : > { %v307_v37 = vadd.f32 %v306_v36, %v305_v35 }
 0x113   : > { %308 = vst [vmem:[%s184_s7] sm:$0xff] %v307_v37 }
 0x114 PF: > { %s14_s12 = sadd.s32 1, %s460_s12  }
 0x115   : > { %p11_p5 = scmp.ge.s32.totalorder %s14_s12, 4  }
 0x117   :  { %13 = sbr.rel (!%p11_p5) target bundleno = 1 (0x1), region = 70 }

// kernel: _forward_impl.3
= control target key start
LH: loop header
LB: loop body
LE: loop exit
PB: predicated region body
PF: predicated region fallthrough
CT: control target
= control target key end

     0   :  { %15 = vsyncpa [#allocation3], 0  ;;  %s1787_s13 = smov 0   ;;  %s2006_s0 = inlined_call_operand.vmem [shape: f32[1,128], index: 0, kind: input, shape index: {}]   ;;  %s2007_s1 = inlined_call_operand.vmem [shape: f32[32,128], index: 1, kind: input, shape index: {}, may-alias: {1,2,3}]   ;;  %s2008_s2 = inlined_call_operand.vmem [shape: f32[32,128], index: 2, kind: input, shape index: {}, may-alias: {1,2,3}]   ;;  %s2009_s3 = inlined_call_operand.vmem [shape: f32[32,128], index: 3, kind: input, shape index: {}, may-alias: {1,2,3}]   ;;  %s2010_s4 = inlined_call_operand.hbm [shape: bf16[640,128], index: 4, kind: input, shape index: {}]   ;;  %s2011_s5 = inlined_call_operand.vmem [shape: f32[1,128], index: 5, kind: input, shape index: {}]   ;;  %s2012_s6 = inlined_call_operand.vmem [shape: bf16[1,128,128], index: 6, kind: input, shape index: {}]   ;;  %s2013_s7 = inlined_call_operand.vmem [shape: f32[1,1,128], index: 7, kind: input, shape index: {}]   ;;  %s2014_s8 = inlined_call_operand.vmem [shape: bf16[128,128], index: 8, kind: input, shape index: {}]   ;;  %s2015_s9 = inlined_call_operand.vmem [shape: f32[1,128], index: 9, kind: input, shape index: {}]   ;;  %s2016_s10 = inlined_call_operand.vmem [shape: f32[32,128], index: 10, kind: output, shape index: {}]  }
   0x1 LB: > { %s1793_s14 = sadd.s32 4294967295, %s1725_s13   ;;  %p1381_p0 = scmp.ge.s32.totalorder %s1725_s13, 1  ;;  %s1725_s13 = sphi %s1787_s13, %s21_s13  }
   0x2   : > { %p293_p1 = scmp.lt.s32.totalorder %s1725_s13, 3  ;;  %s1727_s15 = smov [#allocation2]  }
   0x3   : > { %s308_s16 = sshll.u32 %s1727_s15, 4  ;;  %p2017_p3 = scmp.eq.s32.totalorder %s1793_s14, 0  ;;  %s309_s16 = int_to_ptr.vmem [resolvable:$true] %s308_s16 }
   0x4   : > { %p1797_p2 = pnand %p1381_p0, %p293_p1  ;;  %s1687_s21 = scalar_lea.hbm %s2010_s4, 5120 }
   0x5   : > { %p1688_p6 = scmp.ne.s32.totalorder %s2010_s4, %s1687_s21  ;;  %p1694_p10 = scmp.lt.u32.totalorder %s1687_s21, %s2010_s4 }
   0x6   : > { %s2019_s17 = scalar_select %p1797_p2, 1, 0 }
   0x7   : > { %p1612_p4 = pneg %p1797_p2 }
   0x9   : > { %p1806_p5 = pnand %p2017_p3, %p1612_p4 }
   0xb   : > { %p1689_p7 = pneg %p1806_p5 }
   0xd   : > { %p1690_p8 = pnand %p1689_p7, %p1688_p6 }
   0xf   : > { %p1691_p9 = pneg %p1690_p8 }
  0x11   : > { %p1696_p11 = pnand %p1694_p10, %p1691_p9 }
  0x13   : > { %1699 = shalt.err (!%p1696_p11)
}
  0x14   : > { %s1700_s26 = scalar_lea.vmem %s309_s16, 5120  ;;  %p1708_p1 = scmp.lt.s32.totalorder %s309_s16, %s309_s16 }
  0x15   : > { %p1701_p12 = scmp.ne.s32.totalorder %s309_s16, %s1700_s26  ;;  %p1709_p4 = scmp.lt.s32.totalorder %s1700_s26, %s1700_s26 }
  0x17   : > { %p1703_p13 = pnand %p1701_p12, %p1689_p7  ;;  %p1710_p3 = por %p1709_p4, %p1708_p1 }
  0x19   : > { %p1704_p0 = pneg %p1703_p13 }
  0x1b   : > { %p1711_p2 = pnand %p1710_p3, %p1704_p0 }
  0x1d   : > { %1714 = shalt.err (!%p1711_p2)
}
  0x1e   : > { %s1728_s27 = smov 64   ;;  %s1729_s28 = smov 4  }
  0x1f   : > { %1615 = dma.hbm_to_vmem [thread:$0]  (!%p1806_p5), %s2010_s4, 5120, %s309_s16, [#allocation3], %s1728_s27, %s1728_s27, %s1729_s28  }
  0x20   : > { %p2021_p6 = scmp.ne.s32.totalorder %s2019_s17, 0 }
  0x21   : > { %p2022_p8 = scmp.eq.s32.totalorder (!%p2021_p6), %s1793_s14, 0 }
  0x22   : > { %378 = sbr.rel (%p2021_p6) target bundleno = 764 (0x2fc), region = 60 }
  0x29   : > { %1720 = dma.done.wait (%p2022_p8), [#allocation3], 5120   ;;  %p2023_p7 = pmov %p2022_p8 }
  0x2a   : > { %v1631_v0 = vld [vmem:[#allocation2 + $0x40] sm:$0xff]   ;;  %v1635_v4 = vld [vmem:[#allocation2 + $0x48] sm:$0xff]   ;;  %s1833_s11 = sshll.u32 %s1793_s14, 1  ;;  %s1403_s12 = sshll.u32 %s1793_s14, 4  ;;  %v1639_v8 = vld [vmem:[#allocation2 + $0x50] sm:$0xff]   ;;  %v475_v9 = vlaneseq  ;;  %v1730_v45 = vmov 0.0  }
  0x2b   : > { %1722 = vsyncadd (%p2023_p7), [#allocation3], 4294962176  ;;  %v1632_v1 = vld [vmem:[#allocation2] sm:$0xff]   ;;  %1477 = vmatprep.subr.bf16.mxu0 %v1631_v0  ;;  %v1636_v5 = vld [vmem:[#allocation2 + $0x8] sm:$0xff]   ;;  %s1837_s15 = sadd.s32 4294967295, %s1833_s11  ;;  %p445_p2 = scmp.lt.s32.totalorder %s1833_s11, 3 }
  0x2c   : > { %v1633_v2 = vld [vmem:[#allocation2 + $0xc0] sm:$0xff]   ;;  %1478 = vmatpush3.bf16.msra.mxu0 %v1632_v1  ;;  %v1637_v6 = vld [vmem:[#allocation2 + $0xc8] sm:$0xff]   ;;  %v1640_v10 = vld [vmem:[#allocation2 + $0x10] sm:$0xff]   ;;  %p434_p3 = scmp.gt.s32.totalorder %s1837_s15, 0  ;;  %p1388_p5 = scmp.lt.s32.totalorder %s1837_s15, 3  ;;  %v476_v14 = vshrl.u32 %v475_v9, 7 }
  0x2d   : > { %v1634_v3 = vld [vmem:[#allocation2 + $0x80] sm:$0xff]   ;;  %1499 = vmatprep.subr.bf16.mxu1 %v1633_v2  ;;  %1479 = vmatprep.subr.bf16.mxu0 %v1635_v4  ;;  %v1638_v7 = vld [vmem:[#allocation2 + $0x88] sm:$0xff]   ;;  %v1641_v11 = vld [vmem:[#allocation2 + $0xd0] sm:$0xff]   ;;  %s1476_s14 = sadd.s32 2, %s1833_s11  ;;  %s2026_s11 = smov (!%p445_p2, %s1833_s11), 3  ;;  %vm523_vm11 = vcmask 1046528  }
  0x2e   : > { %1500 = vmatpush3.bf16.msra.mxu1 %v1634_v3  ;;  %v1642_v12 = vld [vmem:[#allocation2 + $0x90] sm:$0xff]   ;;  %v1643_v13 = vld [vmem:[#allocation2 + $0x58] sm:$0xff]   ;;  %s1404_s16 = sadd.s32 4294967288, %s1403_s12  ;;  %v1647_v18 = vld [vmem:[#allocation2 + $0x60] sm:$0xff]   ;;  %p1848_p9 = scmp.lt.s32.totalorder %s1476_s14, 3  ;;  %v477_v21 = vadd.s32 8, %v476_v14 }
  0x2f   : > { %1501 = vmatprep.subr.bf16.mxu1 %v1637_v6  ;;  %v1644_v15 = vld [vmem:[#allocation2 + $0x18] sm:$0xff]   ;;  %v1648_v19 = vld [vmem:[#allocation2 + $0x20] sm:$0xff]   ;;  %s435_s18 = scalar_select %p434_p3, %s1837_s15, 0  ;;  %v478_v23 = vadd.s32 16, %v476_v14  ;;  %v480_v24 = vstv %s1404_s16  ;;  %v1651_v25 = vld [vmem:[#allocation2 + $0x68] sm:$0xff]   ;;  %v479_v29 = vadd.s32 24, %v476_v14 }
  0x30   : > { %1480 = vmatpush3.bf16.msra.mxu0 %v1636_v5  ;;  %v1645_v16 = vld [vmem:[#allocation2 + $0xd8] sm:$0xff]   ;;  %v1649_v20 = vld [vmem:[#allocation2 + $0xe0] sm:$0xff]   ;;  %s2028_s14 = smov (!%p1848_p9, %s1476_s14), 3  ;;  %v1652_v26 = vld [vmem:[#allocation2 + $0x28] sm:$0xff]   ;;  %v481_v28 = vadd.s32 %v480_v24, %v476_v14  ;;  %s1395_s19 = sshll.u32 %s2026_s11, 3  ;;  %v482_v31 = vadd.s32 %v480_v24, %v477_v21  ;;  %vm540_vm12 = vcmask 1044480  }
  0x31   : > { %1481 = vmatprep.subr.bf16.mxu0 %v1639_v8  ;;  %v1646_v17 = vld [vmem:[#allocation2 + $0x98] sm:$0xff]   ;;  %v1650_v22 = vld [vmem:[#allocation2 + $0xa0] sm:$0xff]   ;;  %s2030_s18 = smov (!%p1388_p5, %s435_s18), 3  ;;  %v1653_v27 = vld [vmem:[#allocation2 + $0xe8] sm:$0xff]   ;;  %s2032_s14 = smov (!%p1848_p9, %s2028_s14), 3  ;;  %v483_v36 = vadd.s32 %v480_v24, %v478_v23  ;;  %v484_v38 = vadd.s32 %v480_v24, %v479_v29  ;;  %vm532_vm14 = vcmask 1045504  }
  0x32   : > { %1502 = vmatpush3.bf16.msra.mxu1 %v1638_v7  ;;  %v1654_v30 = vld [vmem:[#allocation2 + $0xa8] sm:$0xff]   ;;  %v1655_v32 = vld [vmem:[#allocation2 + $0x70] sm:$0xff]   ;;  %s1393_s20 = sshll.u32 %s2030_s18, 3  ;;  %vm485_vm0 = vcmp.ge.s32.totalorder %v481_v28, 0  ;;  %s448_s23 = scalar_lea.vmem %s2008_s2, %s1395_s19  ;;  %vm486_vm1 = vcmp.ge.s32.totalorder %v482_v31, 0  ;;  %v1659_v37 = vld [vmem:[#allocation2 + $0x78] sm:$0xff]  }
  0x33   : > { %1503 = vmatprep.subr.bf16.mxu1 %v1641_v11  ;;  %v1656_v33 = vld [vmem:[#allocation2 + $0x30] sm:$0xff]   ;;  %s439_s26 = scalar_lea.vmem %s2007_s1, %s1393_s20  ;;  %s1873_s27 = sshll.u32 %s2032_s14, 3  ;;  %v1660_v39 = vld [vmem:[#allocation2 + $0x38] sm:$0xff]   ;;  %vm489_vm2 = vcmp.lt.s32.totalorder %v481_v28, 19  ;;  %vm490_vm3 = vcmp.lt.s32.totalorder %v482_v31, 19  ;;  %v470_v42 = vld [vmem:[%s448_s23] sm:$0xff] }
  0x34   : > { %1482 = vmatpush3.bf16.msra.mxu0 %v1640_v10  ;;  %v1657_v34 = vld [vmem:[#allocation2 + $0xf0] sm:$0xff]   ;;  %v1661_v40 = vld [vmem:[#allocation2 + $0xf8] sm:$0xff]   ;;  %v469_v41 = vld [vmem:[%s439_s26] sm:$0xff]  ;;  %vm487_vm4 = vcmp.ge.s32.totalorder %v483_v36, 0  ;;  %vm491_vm5 = vcmp.lt.s32.totalorder %v483_v36, 19  ;;  %s457_s30 = scalar_lea.vmem %s2009_s3, %s1873_s27  ;;  %vm488_vm7 = vcmp.ge.s32.totalorder %v484_v38, 0  ;;  %s466_s22 = scalar_lea.vmem %s2016_s10, %s1395_s19 }
  0x35   : > { %1483 = vmatprep.subr.bf16.mxu0 %v1643_v13  ;;  %v1658_v35 = vld [vmem:[#allocation2 + $0xb0] sm:$0xff]   ;;  %v471_v43 = vld [vmem:[%s448_s23 + $0x8] sm:$0xff]  ;;  %vm493_vm6 = vmand %vm485_vm0, %vm489_vm2  ;;  %vm492_vm8 = vcmp.lt.s32.totalorder %v484_v38, 19  ;;  %vm1731_vm15 = vmmov 0   ;;  %vm549_vm0 = vcmask 1043456  }
  0x36   : > { %1504 = vmatpush3.bf16.msra.mxu1 %v1642_v12  ;;  %v1405_v44 = vld [vmem:[%s2006_s0] ss:$0 sm:$0xff]  ;;  %vm494_vm9 = vmand %vm486_vm1, %vm490_vm3  ;;  %v1662_v49 = vld [vmem:[#allocation2 + $0xb8] sm:$0xff]  }
  0x37   : > { %1505 = vmatprep.subr.bf16.mxu1 %v1645_v16  ;;  %v504_v46 = vsub.f32 %v469_v41, %v1405_v44  ;;  %v505_v47 = vsub.f32 %v470_v42, %v1405_v44  ;;  %v506_v48 = vsub.f32 %v471_v43, %v1405_v44  ;;  %vm495_vm10 = vmand %vm487_vm4, %vm491_vm5  ;;  %v472_v50 = vld [vmem:[%s457_s30] sm:$0xff]  ;;  %v1666_v28 = vld [vmem:[#allocation2 + $0x118] sm:$0xff]  }
  0x38   : > { %1484 = vmatpush3.bf16.msra.mxu0 %v1644_v15  ;;  %vm496_vm13 = vmand %vm488_vm7, %vm492_vm8  ;;  %v507_v54 = vsub.f32 %v472_v50, %v1405_v44  ;;  %v1663_v16 = vld [vmem:[#allocation2 + $0x100] sm:$0xff]   ;;  %v1669_v36 = vld [vmem:[#allocation2 + $0x130] sm:$0xff]  }
  0x39   : > { %1485 = vmatprep.subr.bf16.mxu0 %v1647_v18  ;;  %v516_v51 = vsel %vm493_vm6, %v504_v46, 0.0  ;;  %v1887_v52 = vsel %vm494_vm9, %v505_v47, 0.0  ;;  %v1889_v53 = vsel %vm495_vm10, %v506_v48, 0.0  ;;  %v1667_v29 = vld [vmem:[#allocation2 + $0x120] sm:$0xff]   ;;  %v1672_v44 = vld [vmem:[%s2012_s6 + $0x8] sm:$0xff]   ;;  %v1673_v46 = vld [vmem:[%s2012_s6 + $0x10] sm:$0xff]  }
  0x3a   : > { %1506 = vmatpush3.bf16.msra.mxu1 %v1646_v17  ;;  %v524_v55 = vrot.slane %v516_v51, 1  ;;  %v525_v56 = vrot.slane %v1887_v52, 1  ;;  %v527_v57 = vrot.slane %v1889_v53, 1  ;;  %v558_v58 = vpack.c.bf16 %v1887_v52, %v516_v51  ;;  %v1671_v43 = vld [vmem:[%s2012_s6] sm:$0xff]   ;;  %v1674_v47 = vld [vmem:[%s2012_s6 + $0x18] sm:$0xff]   ;;  %v1677_v50 = vld [vmem:[%s2012_s6 + $0x30] sm:$0xff]  }
  0x3b   : > { %1507 = vmatprep.subr.bf16.mxu1 %v1649_v20  ;;  %v563_v59 = vpack.c.bf16 %v1889_v53, %v1889_v53  ;;  %v519_v60 = vsel %vm496_vm13, %v507_v54, 0.0  ;;  %v541_v61 = vrot.slane %v1887_v52, 3  ;;  %v542_v62 = vrot.slane %v1889_v53, 3  ;;  %v1675_v48 = vld [vmem:[%s2012_s6 + $0x20] sm:$0xff]   ;;  %v1678_v51 = vld [vmem:[%s2012_s6 + $0x38] sm:$0xff]   ;;  %v1681_v54 = vld [vmem:[%s2014_s8 + $0x10] sm:$0xff]  }
  0x3c   : > { %1486 = vmatpush3.bf16.msra.mxu0 %v1648_v19  ;;  %v526_v63 = vsel %vm523_vm11, %v524_v55, %v525_v56  ;;  %v528_v0 = vsel %vm523_vm11, %v525_v56, %v527_v57  ;;  %v564_v1 = vpack.c.bf16 %v527_v57, %v527_v57  ;;  %v666_v2 = vrot.slane %v558_v58, 3  ;;  %v1682_v55 = vld [vmem:[%s2014_s8 + $0x18] sm:$0xff]   ;;  %v1683_v56 = vld [vmem:[%s2014_s8 + $0x20] sm:$0xff]   ;;  %v1684_v57 = vld [vmem:[%s2014_s8 + $0x28] sm:$0xff]  }
  0x3d   : > { %1487 = vmatprep.subr.bf16.mxu0 %v1651_v25  ;;  %v559_v3 = vpack.c.bf16 %v528_v0, %v526_v63  ;;  %v667_v4 = vrot.slane %v563_v59, 3  ;;  %v543_v5 = vsel %vm540_vm12, %v541_v61, %v542_v62  ;;  %v544_v6 = vrot.slane %v519_v60, 3  ;;  %v1664_v25 = vld [vmem:[#allocation2 + $0x108] sm:$0xff]   ;;  %v1406_v59 = vld [vmem:[%s2011_s5] ss:$0 sm:$0xff] }
  0x3e   : > { %1508 = vmatpush3.bf16.msra.mxu1 %v1650_v22  ;;  %v670_v7 = vrot.slane %v564_v1, 3  ;;  %v561_v8 = vpack.c.bf16 %v543_v5, %v541_v61  ;;  %v533_v9 = vrot.slane %v1887_v52, 2  ;;  %v534_v12 = vrot.slane %v1889_v53, 2 }
  0x3f   : > { %1509 = vmatprep.subr.bf16.mxu1 %v1653_v27  ;;  %v669_v10 = vrot.slane %v559_v3, 3  ;;  %v545_v11 = vsel %vm540_vm12, %v542_v62, %v544_v6  ;;  %v668_v13 = vsel %vm540_vm12, %v666_v2, %v667_v4  ;;  %v1665_v27 = vld [vmem:[#allocation2 + $0x110] sm:$0xff]   ;;  %v550_v31 = vrot.slane %v1887_v52, 4  ;;  %v1679_v52 = vld [vmem:[%s2014_s8] sm:$0xff]  }
  0x40   : > { %1488 = vmatpush3.bf16.msra.mxu0 %v1652_v26  ;;  %v566_v14 = vpack.c.bf16 %v545_v11, %v545_v11  ;;  %v675_v15 = vrot.slane %v561_v8, 3  ;;  %v535_v18 = vsel %vm532_vm14, %v533_v9, %v534_v12  ;;  %v565_v19 = vpack.c.bf16 %v534_v12, %v534_v12 }
  0x41   : > { %1489 = vmatprep.subr.bf16.mxu0 %v1655_v32  ;;  %v671_v17 = vsel %vm540_vm12, %v669_v10, %v670_v7  ;;  %v560_v21 = vpack.c.bf16 %v535_v18, %v533_v9  ;;  %v551_v32 = vrot.slane %v1889_v53, 4  ;;  %v1680_v53 = vld [vmem:[%s2014_s8 + $0x8] sm:$0xff]  }
  0x42   : > { %1510 = vmatpush3.bf16.msra.mxu1 %v1654_v30  ;;  %958 = vmatprep.mubr.bf16.mxu0 %v671_v17  ;;  %v676_v20 = vrot.slane %v566_v14, 3  ;;  %v673_v22 = vrot.slane %v565_v19, 3  ;;  %v553_v30 = vrot.slane %v519_v60, 4 }
  0x43   : > { %1511 = vmatprep.subr.bf16.mxu1 %v1657_v34  ;;  %v672_v24 = vrot.slane %v560_v21, 3  ;;  %v552_v34 = vsel %vm549_vm0, %v550_v31, %v551_v32  ;;  %v1686_v21 = vld [vmem:[%s2014_s8 + $0x38] sm:$0xff]  }
  0x44   : > { %1490 = vmatpush3.bf16.msra.mxu0 %v1656_v33  ;;  %v677_v23 = vsel %vm540_vm12, %v675_v15, %v676_v20  ;;  %v1668_v33 = vld [vmem:[#allocation2 + $0x128] sm:$0xff]   ;;  %v1685_v20 = vld [vmem:[%s2014_s8 + $0x30] sm:$0xff]  }
  0x45   : > { %1491 = vmatprep.subr.bf16.mxu0 %v1659_v37  ;;  %999 = vmatprep.mubr.bf16.mxu1 %v677_v23  ;;  %v674_v26 = vsel %vm540_vm12, %v672_v24, %v673_v22  ;;  %v562_v37 = vpack.c.bf16 %v552_v34, %v550_v31  ;;  %v1447_v22 = vld [vmem:[%s2013_s7] ss:$0 sm:$0xff] }
  0x46   : > { %1512 = vmatpush3.bf16.msra.mxu1 %v1658_v35  ;;  %v554_v35 = vsel %vm549_vm0, %v551_v32, %v553_v30 }
  0x47   : > { %1513 = vmatprep.subr.bf16.mxu1 %v1661_v40  ;;  %v567_v38 = vpack.c.bf16 %v554_v35, %v554_v35  ;;  %v678_v40 = vrot.slane %v562_v37, 3 }
  0x48   : > { %1492 = vmatpush3.bf16.msra.mxu0 %v1660_v39  ;;  %v1670_v39 = vld [vmem:[#allocation2 + $0x138] sm:$0xff]  }
  0x49   : > { %1548 = vmatprep.subr.bf16.mxu0 %v1730_v45  ;;  %v679_v41 = vrot.slane %v567_v38, 3 }
  0x4a   : > { %1514 = vmatpush3.bf16.msra.mxu1 %v1662_v49  ;;  %v1676_v49 = vld [vmem:[%s2012_s6 + $0x28] sm:$0xff]  }
  0x4b   : > { %1568 = vmatprep.subr.bf16.mxu1 %v1730_v45  ;;  %959 = vmatmul.mubr.bf16.vlgmr.msra.gmra.mrb[0].mxu0 %v668_v13  ;;  %v680_v42 = vsel %vm540_vm12, %v678_v40, %v679_v41 }
  0x4c   : > { %1549 = vmatpush3.bf16.msra.mxu0 %v1663_v16  ;;  %1564 = vmatprep.mubr.msk.bf16.mxu0 %vm1731_vm15, %v1730_v45 }
  0x4d   : > { %1550 = vmatprep.subr.bf16.mxu0 %v1730_v45  ;;  %1000 = vmatmul.mubr.bf16.vlgmr.msra.gmra.mrb[0].mxu1 %v674_v26 }
  0x4e   : > { %1584 = vmatprep.mubr.msk.bf16.mxu1 %vm1731_vm15, %v1730_v45  ;;  %1569 = vmatpush3.bf16.msra.mxu1 %v1671_v43 }
  0x4f   : > { %1570 = vmatprep.subr.bf16.mxu1 %v1730_v45 }
  0x50   : > { %1551 = vmatpush3.bf16.msra.mxu0 %v1664_v25 }
  0x51   : > { %1552 = vmatprep.subr.bf16.mxu0 %v1730_v45 }
  0x52   : > { %1571 = vmatpush3.bf16.msra.mxu1 %v1672_v44 }
  0x53   : > { %1572 = vmatprep.subr.bf16.mxu1 %v1730_v45 }
  0x54   : > { %1553 = vmatpush3.bf16.msra.mxu0 %v1665_v27 }
  0x55   : > { %1554 = vmatprep.subr.bf16.mxu0 %v1730_v45 }
  0x56   : > { %1573 = vmatpush3.bf16.msra.mxu1 %v1673_v46 }
  0x57   : > { %1574 = vmatprep.subr.bf16.mxu1 %v1730_v45 }
  0x58   : > { %1555 = vmatpush3.bf16.msra.mxu0 %v1666_v28 }
  0x59   : > { %1556 = vmatprep.subr.bf16.mxu0 %v1730_v45 }
  0x5a   : > { %1575 = vmatpush3.bf16.msra.mxu1 %v1674_v47 }
  0x5b   : > { %1576 = vmatprep.subr.bf16.mxu1 %v1730_v45 }
  0x5c   : > { %1557 = vmatpush3.bf16.msra.mxu0 %v1667_v29 }
  0x5d   : > { %1558 = vmatprep.subr.bf16.mxu0 %v1730_v45 }
  0x5e   : > { %1577 = vmatpush3.bf16.msra.mxu1 %v1675_v48 }
  0x5f   : > { %1578 = vmatprep.subr.bf16.mxu1 %v1730_v45 }
  0x60   : > { %1559 = vmatpush3.bf16.msra.mxu0 %v1668_v33 }
  0x61   : > { %1560 = vmatprep.subr.bf16.mxu0 %v1730_v45 }
  0x62   : > { %1579 = vmatpush3.bf16.msra.mxu1 %v1676_v49 }
  0x63   : > { %1580 = vmatprep.subr.bf16.mxu1 %v1730_v45 }
  0x64   : > { %1561 = vmatpush3.bf16.msra.mxu0 %v1669_v36 }
  0x65   : > { %1562 = vmatprep.subr.bf16.mxu0 %v1730_v45 }
  0x66   : > { %1581 = vmatpush3.bf16.msra.mxu1 %v1677_v50 }
  0x67   : > { %1582 = vmatprep.subr.bf16.mxu1 %v1730_v45 }
  0x68   : > { %1563 = vmatpush3.bf16.msra.mxu0 %v1670_v39 }
  0x69   : > { %1588 = vmatprep.subr.bf16.mxu0 %v1730_v45 }
  0x6a   : > { %1583 = vmatpush3.bf16.msra.mxu1 %v1678_v51 }
  0x6b   : > { %1565 = vmatmul.mubr.bf16.vlgmr.msra.gmra.mrb[4].mxu0 %v680_v42 }
  0x6c   : > { %1604 = vmatprep.mubr.msk.bf16.mxu0 %vm1731_vm15, %v1730_v45  ;;  %1589 = vmatpush3.bf16.msra.mxu0 %v1679_v52 }
  0x6d   : > { %1590 = vmatprep.subr.bf16.mxu0 %v1730_v45 }
  0x70   : > { %1591 = vmatpush3.bf16.msra.mxu0 %v1680_v53 }
  0x71   : > { %1592 = vmatprep.subr.bf16.mxu0 %v1730_v45 }
  0x74   : > { %1593 = vmatpush3.bf16.msra.mxu0 %v1681_v54 }
  0x75   : > { %1594 = vmatprep.subr.bf16.mxu0 %v1730_v45 }
  0x78   : > { %1595 = vmatpush3.bf16.msra.mxu0 %v1682_v55 }
  0x79   : > { %1596 = vmatprep.subr.bf16.mxu0 %v1730_v45 }
  0x7c   : > { %1597 = vmatpush3.bf16.msra.mxu0 %v1683_v56 }
  0x7d   : > { %1598 = vmatprep.subr.bf16.mxu0 %v1730_v45 }
  0x80   : > { %1599 = vmatpush3.bf16.msra.mxu0 %v1684_v57 }
  0x81   : > { %1600 = vmatprep.subr.bf16.mxu0 %v1730_v45 }
  0x84   : > { %1601 = vmatpush3.bf16.msra.mxu0 %v1685_v20 }
  0x85   : > { %1602 = vmatprep.subr.bf16.mxu0 %v1730_v45  ;;  %v1456_v45 = vld [vmem:[%s2015_s9] ss:$0 sm:$0xff] }
  0x88   : > { %1603 = vmatpush3.bf16.msra.mxu0 %v1686_v21 }
 0x11e   : > { %v1493_v58 = vpop.f32.mrb[0].mxu0 }
 0x11f   : > { %v1494_v60 = vpop.f32.mrb[1].mxu0 }
 0x120   : > { %v1495_v61 = vadd.f32 %v1494_v60, %v1493_v58  ;;  %v1496_v62 = vpop.f32.mrb[2].mxu0  ;;  %v1515_v1 = vpop.f32.mrb[0].mxu1 }
 0x121   : > { %v1497_v63 = vpop.f32.mrb[3].mxu0  ;;  %v1516_v3 = vpop.f32.mrb[1].mxu1 }
 0x122   : > { %v961_v0 = vadd.f32 %v1495_v61, %v1406_v59  ;;  %v1498_v2 = vadd.f32 %v1497_v63, %v1496_v62  ;;  %v1517_v5 = vadd.f32 %v1516_v3, %v1515_v1  ;;  %v1518_v6 = vpop.f32.mrb[2].mxu1 }
 0x123   : > { %v1519_v7 = vpop.f32.mrb[3].mxu1 }
 0x124   : > { %v964_v4 = vadd.f32 %v1498_v2, %v1406_v59  ;;  %v1520_v8 = vadd.f32 %v1519_v7, %v1518_v6  ;;  %v1002_v9 = vadd.f32 %v1517_v5, %v961_v0 }
 0x126   : > { %v1005_v10 = vadd.f32 %v1520_v8, %v964_v4 }
 0x13e   : > { %v1042_v11 = vpop.f32.mrb[4].mxu0 }
 0x13f   : > { %v1043_v12 = vadd.f32 %v1042_v11, %v1002_v9  ;;  %v1566_v13 = vpop.f32.mrb[5].mxu0 }
 0x140   : > { %v1045_v14 = vpop.f32.mrb[6].mxu0 }
 0x141   : > { %v1046_v15 = vadd.f32 %v1045_v14, %v1005_v10  ;;  %v1567_v16 = vpop.f32.mrb[7].mxu0  ;;  %v1049_v17 = vmax.f32 %v1043_v12, 0.0 }
 0x143   : > { %v1050_v18 = vmax.f32 %v1046_v15, 0.0 }
 0x145   : > { %v1051_v19 = vpack.c.bf16 %v1050_v18, %v1049_v17 }
 0x147   : > { %1585 = vmatmul.mubr.bf16.vlgmr.msra.gmra.mrb[4].mxu1 %v1051_v19 }
 0x21a   : > { %v1157_v23 = vpop.f32.mrb[4].mxu1 }
 0x21b   : > { %v1158_v24 = vadd.f32 %v1447_v22, %v1157_v23  ;;  %v1586_v25 = vpop.f32.mrb[5].mxu1 }
 0x21c   : > { %v1160_v26 = vpop.f32.mrb[6].mxu1 }
 0x21d   : > { %v1161_v27 = vadd.f32 %v1447_v22, %v1160_v26  ;;  %v1587_v28 = vpop.f32.mrb[7].mxu1  ;;  %v1164_v29 = vmax.f32 %v1158_v24, 0.0 }
 0x21f   : > { %v1165_v30 = vmax.f32 %v1161_v27, 0.0 }
 0x221   : > { %v1166_v31 = vpack.c.bf16 %v1165_v30, %v1164_v29 }
 0x223   : > { %1605 = vmatmul.mubr.bf16.vlgmr.msra.gmra.mrb[8].mxu0 %v1166_v31 }
 0x2f6   : > { %v1272_v32 = vpop.f32.mrb[8].mxu0 }
 0x2f7   : > { %v1273_v33 = vadd.f32 %v1456_v45, %v1272_v32  ;;  %v1606_v34 = vpop.f32.mrb[9].mxu0 }
 0x2f8   : > { %v1275_v35 = vpop.f32.mrb[10].mxu0 }
 0x2f9   : > { %1279 = vst [vmem:[%s466_s22] sm:$0xff] %v1273_v33  ;;  %v1276_v36 = vadd.f32 %v1456_v45, %v1275_v35  ;;  %v1607_v37 = vpop.f32.mrb[11].mxu0 }
 0x2fb   : > { %1280 = vst [vmem:[%s466_s22 + $0x8] sm:$0xff] %v1276_v36 }
 0x2fc PF: > { %s21_s13 = sadd.s32 1, %s1725_s13  }
 0x2fd   : > { %p18_p10 = scmp.ge.s32.totalorder %s21_s13, 4  }
 0x2ff   :  { %20 = sbr.rel (!%p18_p10) target bundleno = 1 (0x1), region = 101 }
 0x306   :  { %1303 = vsyncpa [#allocation3], 1 }
 0x307   :  { %1305 = vsyncpa [#allocation3 + $0x1], 1 }

// kernel: _forward_impl.2
= control target key start
LH: loop header
LB: loop body
LE: loop exit
PB: predicated region body
PF: predicated region fallthrough
CT: control target
= control target key end

     0   :  { %s482_s12 = smov 0   ;;  %s527_s0 = inlined_call_operand.vmem [shape: f32[32,32], index: 0, kind: input, shape index: {}]   ;;  %s528_s1 = inlined_call_operand.vmem [shape: f32[32,128], index: 1, kind: input, shape index: {}]   ;;  %s529_s2 = inlined_call_operand.vmem [shape: f32[32,128], index: 2, kind: output, shape index: {0}]   ;;  %s530_s3 = inlined_call_operand.vmem [shape: f32[2,8,128], index: 3, kind: output, shape index: {1}]  }
   0x1 LB: > { %s488_s13 = sadd.s32 4294967295, %s460_s12   ;;  %p400_p0 = scmp.ge.s32.totalorder %s460_s12, 1  ;;  %s460_s12 = sphi %s482_s12, %s14_s12  }
   0x2   : > { %p141_p1 = scmp.lt.s32.totalorder %s460_s12, 3 }
   0x4   : > { %p142_p2 = pnand %p400_p0, %p141_p1 }
   0x5   : > { %v193_v0 = vld [vmem:[%s528_s1] sm:$0xff] (!%p142_p2)  ;;  %v194_v1 = vld [vmem:[%s528_s1 + $0x8] sm:$0xff] (!%p142_p2)  ;;  %v195_v2 = vld [vmem:[%s528_s1 + $0x10] sm:$0xff] (!%p142_p2)  ;;  %s401_s20 = sshll.u32 (!%p142_p2), %s488_s13, 1  ;;  %vm197_vm0 = vcmask (!%p142_p2), 261120   ;;  %v279_v14 = vlaneseq (!%p142_p2)  ;;  %s410_s27 = sshll.u32 (!%p142_p2), %s488_s13, 4 }
   0x6   : > { %145 = sbr.rel (%p142_p2) target bundleno = 276 (0x114), region = 28  ;;  %v430_v3 = vpack.c.bf16 (!%p142_p2), %v194_v1, %v193_v0  ;;  %v196_v4 = vld [vmem:[%s528_s1 + $0x18] sm:$0xff] (!%p142_p2)  ;;  %p170_p3 = scmp.lt.s32.totalorder (!%p142_p2), %s401_s20, 3  ;;  %v294_v22 = vstv (!%p142_p2), %s410_s27 }
   0x7   : > { %v434_v5 = vpack.c.bf16 (!%p142_p2), %v196_v4, %v195_v2  ;;  %v280_v15 = vand.u32 (!%p142_p2), 127, %v279_v14  ;;  %v292_v17 = vshrl.u32 (!%p142_p2), %v279_v14, 7  ;;  %p181_p4 = scmp.lt.s32.totalorder (!%p142_p2), %s488_s13, 1 }
   0x8   : > { %431 = vmatprep.subr.bf16.mxu0 (!%p142_p2), %v430_v3 }
   0x9   : > { %433 = vmatpush3.bf16.msra.mxu0 (!%p142_p2), %v430_v3  ;;  %vm281_vm1 = vcmp.lt.s32.totalorder (!%p142_p2), %v280_v15, 8  ;;  %v293_v21 = vadd.s32 (!%p142_p2), 8, %v292_v17  ;;  %v295_v24 = vadd.s32 (!%p142_p2), %v294_v22, %v292_v17 }
   0xa   : > { %435 = vmatprep.subr.bf16.mxu0 (!%p142_p2), %v434_v5 }
   0xb   : > { %v296_v23 = vadd.s32 (!%p142_p2), %v294_v22, %v293_v21  ;;  %vm297_vm3 = vcmp.lt.s32.totalorder (!%p142_p2), %v295_v24, 19 }
   0xd   : > { %s532_s20 = smov (!%p170_p3, %s401_s20), 3  ;;  %437 = vmatpush3.bf16.msra.mxu0 %v434_v5  ;;  %vm298_vm2 = vcmp.lt.s32.totalorder %v296_v23, 19  ;;  %s534_s13 = smov (!%p181_p4, %s488_s13), 1 }
   0xe   : > { %s402_s23 = sshll.u32 %s532_s20, 3  ;;  %s405_s4 = sshll.u32 %s534_s13, 3 }
   0xf   : > { %s173_s26 = scalar_lea.vmem %s527_s0, %s402_s23  ;;  %s179_s30 = scalar_lea.vmem %s529_s2, %s402_s23 }
  0x10   : > { %v185_v6 = vld [vmem:[%s173_s26] sm:$0xff]  ;;  %v186_v7 = vld [vmem:[%s173_s26 + $0x8] sm:$0xff]  ;;  %s184_s7 = scalar_lea.vmem %s530_s3, %s405_s4 }
  0x11   : > { %v187_v8 = vmul.f32 1.442695, %v185_v6  ;;  %v189_v9 = vmul.f32 1.442695, %v186_v7 }
  0x13   : > { %446 = vpow2.f32 %v187_v8 }
  0x14   : > { %448 = vpow2.f32 %v189_v9 }
  0x1d   : > { %v447_v10 = vpop.eup %446 }
  0x1e   : > { %v449_v11 = vpop.eup %448  ;;  %v406_v12 = vadd.f32 -4.4194174e-05, %v447_v10 }
  0x1f   : > { %v407_v13 = vadd.f32 -4.4194174e-05, %v449_v11 }
  0x20   : > { %427 = vmatprep.mubr.msk.f32.mxu0 %vm197_vm0, %v406_v12 }
  0x21   : > { %428 = vmatmul.mubr.msk.f32.vlgmr.msra.gmra.mrb[0].mxu0 %vm197_vm0, %v407_v13 }
  0xf4   : > { %v429_v16 = vpop.f32.mrb[0].mxu0 }
  0xf5   : > { %v283_v18 = vsel %vm281_vm1, %v429_v16, 1.0  ;;  %v270_v19 = vpop.f32.mrb[1].mxu0 }
  0xf6   : > { %450 = vlog2.f32 %v283_v18  ;;  %v282_v20 = vsel %vm281_vm1, %v270_v19, 1.0 }
  0xf7   : > { %452 = vlog2.f32 %v282_v20 }
 0x100   : > { %v451_v25 = vpop.eup %450 }
 0x101   : > { %v453_v26 = vpop.eup %452  ;;  %v287_v27 = vmul.f32 0.6931472, %v451_v25 }
 0x102   : > { %v285_v28 = vmul.f32 0.6931472, %v453_v26 }
 0x103   : > { %v300_v29 = vsel %vm298_vm2, %v287_v27, 0.0  ;;  %289 = vst [vmem:[%s179_s30 + $0x8] sm:$0xff] %v287_v27 }
 0x104   : > { %288 = vst [vmem:[%s179_s30] sm:$0xff] %v285_v28  ;;  %v299_v30 = vsel %vm297_vm3, %v285_v28, 0.0 }
 0x105   : > { %v301_v31 = vadd.f32 %v300_v29, %v299_v30 }
 0x107   : > { %v302_v32 = vrot.slane %v301_v31, 4 }
 0x109   : > { %v303_v33 = vadd.f32 %v302_v32, %v301_v31 }
 0x10b   : > { %v304_v34 = vrot.slane %v303_v33, 2 }
 0x10d   : > { %v305_v35 = vadd.f32 %v304_v34, %v303_v33 }
 0x10f   : > { %v306_v36 = vrot.slane %v305_v35, 1 }
 0x111   : > { %v307_v37 = vadd.f32 %v306_v36, %v305_v35 }
 0x113   : > { %308 = vst [vmem:[%s184_s7] sm:$0xff] %v307_v37 }
 0x114 PF: > { %s14_s12 = sadd.s32 1, %s460_s12  }
 0x115   : > { %p11_p5 = scmp.ge.s32.totalorder %s14_s12, 4  }
 0x117   :  { %13 = sbr.rel (!%p11_p5) target bundleno = 1 (0x1), region = 70 }

// kernel: _forward_impl.3
= control target key start
LH: loop header
LB: loop body
LE: loop exit
PB: predicated region body
PF: predicated region fallthrough
CT: control target
= control target key end

     0   :  { %15 = vsyncpa [#allocation3], 0  ;;  %s1787_s13 = smov 0   ;;  %s2006_s0 = inlined_call_operand.vmem [shape: f32[1,128], index: 0, kind: input, shape index: {}]   ;;  %s2007_s1 = inlined_call_operand.vmem [shape: f32[32,128], index: 1, kind: input, shape index: {}, may-alias: {1,2,3}]   ;;  %s2008_s2 = inlined_call_operand.vmem [shape: f32[32,128], index: 2, kind: input, shape index: {}, may-alias: {1,2,3}]   ;;  %s2009_s3 = inlined_call_operand.vmem [shape: f32[32,128], index: 3, kind: input, shape index: {}, may-alias: {1,2,3}]   ;;  %s2010_s4 = inlined_call_operand.hbm [shape: bf16[640,128], index: 4, kind: input, shape index: {}]   ;;  %s2011_s5 = inlined_call_operand.vmem [shape: f32[1,128], index: 5, kind: input, shape index: {}]   ;;  %s2012_s6 = inlined_call_operand.vmem [shape: bf16[1,128,128], index: 6, kind: input, shape index: {}]   ;;  %s2013_s7 = inlined_call_operand.vmem [shape: f32[1,1,128], index: 7, kind: input, shape index: {}]   ;;  %s2014_s8 = inlined_call_operand.vmem [shape: bf16[128,128], index: 8, kind: input, shape index: {}]   ;;  %s2015_s9 = inlined_call_operand.vmem [shape: f32[1,128], index: 9, kind: input, shape index: {}]   ;;  %s2016_s10 = inlined_call_operand.vmem [shape: f32[32,128], index: 10, kind: output, shape index: {}]  }
   0x1 LB: > { %s1793_s14 = sadd.s32 4294967295, %s1725_s13   ;;  %p1381_p0 = scmp.ge.s32.totalorder %s1725_s13, 1  ;;  %s1725_s13 = sphi %s1787_s13, %s21_s13  }
   0x2   : > { %p293_p1 = scmp.lt.s32.totalorder %s1725_s13, 3  ;;  %s1727_s15 = smov [#allocation2]  }
   0x3   : > { %s308_s16 = sshll.u32 %s1727_s15, 4  ;;  %p2017_p3 = scmp.eq.s32.totalorder %s1793_s14, 0  ;;  %s309_s16 = int_to_ptr.vmem [resolvable:$true] %s308_s16 }
   0x4   : > { %p1797_p2 = pnand %p1381_p0, %p293_p1  ;;  %s1687_s21 = scalar_lea.hbm %s2010_s4, 5120 }
   0x5   : > { %p1688_p6 = scmp.ne.s32.totalorder %s2010_s4, %s1687_s21  ;;  %p1694_p10 = scmp.lt.u32.totalorder %s1687_s21, %s2010_s4 }
   0x6   : > { %s2019_s17 = scalar_select %p1797_p2, 1, 0 }
   0x7   : > { %p1612_p4 = pneg %p1797_p2 }
   0x9   : > { %p1806_p5 = pnand %p2017_p3, %p1612_p4 }
   0xb   : > { %p1689_p7 = pneg %p1806_p5 }
   0xd   : > { %p1690_p8 = pnand %p1689_p7, %p1688_p6 }
   0xf   : > { %p1691_p9 = pneg %p1690_p8 }
  0x11   : > { %p1696_p11 = pnand %p1694_p10, %p1691_p9 }
  0x13   : > { %1699 = shalt.err (!%p1696_p11)
}
  0x14   : > { %s1700_s26 = scalar_lea.vmem %s309_s16, 5120  ;;  %p1708_p1 = scmp.lt.s32.totalorder %s309_s16, %s309_s16 }
  0x15   : > { %p1701_p12 = scmp.ne.s32.totalorder %s309_s16, %s1700_s26  ;;  %p1709_p4 = scmp.lt.s32.totalorder %s1700_s26, %s1700_s26 }
  0x17   : > { %p1703_p13 = pnand %p1701_p12, %p1689_p7  ;;  %p1710_p3 = por %p1709_p4, %p1708_p1 }
  0x19   : > { %p1704_p0 = pneg %p1703_p13 }
  0x1b   : > { %p1711_p2 = pnand %p1710_p3, %p1704_p0 }
  0x1d   : > { %1714 = shalt.err (!%p1711_p2)
}
  0x1e   : > { %s1728_s27 = smov 64   ;;  %s1729_s28 = smov 4  }
  0x1f   : > { %1615 = dma.hbm_to_vmem [thread:$0]  (!%p1806_p5), %s2010_s4, 5120, %s309_s16, [#allocation3], %s1728_s27, %s1728_s27, %s1729_s28  }
  0x20   : > { %p2021_p6 = scmp.ne.s32.totalorder %s2019_s17, 0 }
  0x21   : > { %p2022_p8 = scmp.eq.s32.totalorder (!%p2021_p6), %s1793_s14, 0 }
  0x22   : > { %378 = sbr.rel (%p2021_p6) target bundleno = 764 (0x2fc), region = 60 }
  0x29   : > { %1720 = dma.done.wait (%p2022_p8), [#allocation3], 5120   ;;  %p2023_p7 = pmov %p2022_p8 }
  0x2a   : > { %v1631_v0 = vld [vmem:[#allocation2 + $0x40] sm:$0xff]   ;;  %v1635_v4 = vld [vmem:[#allocation2 + $0x48] sm:$0xff]   ;;  %s1833_s11 = sshll.u32 %s1793_s14, 1  ;;  %s1403_s12 = sshll.u32 %s1793_s14, 4  ;;  %v1639_v8 = vld [vmem:[#allocation2 + $0x50] sm:$0xff]   ;;  %v475_v9 = vlaneseq  ;;  %v1730_v45 = vmov 0.0  }
  0x2b   : > { %1722 = vsyncadd (%p2023_p7), [#allocation3], 4294962176  ;;  %v1632_v1 = vld [vmem:[#allocation2] sm:$0xff]   ;;  %1477 = vmatprep.subr.bf16.mxu0 %v1631_v0  ;;  %v1636_v5 = vld [vmem:[#allocation2 + $0x8] sm:$0xff]   ;;  %s1837_s15 = sadd.s32 4294967295, %s1833_s11  ;;  %p445_p2 = scmp.lt.s32.totalorder %s1833_s11, 3 }
  0x2c   : > { %v1633_v2 = vld [vmem:[#allocation2 + $0xc0] sm:$0xff]   ;;  %1478 = vmatpush3.bf16.msra.mxu0 %v1632_v1  ;;  %v1637_v6 = vld [vmem:[#allocation2 + $0xc8] sm:$0xff]   ;;  %v1640_v10 = vld [vmem:[#allocation2 + $0x10] sm:$0xff]   ;;  %p434_p3 = scmp.gt.s32.totalorder %s1837_s15, 0  ;;  %p1388_p5 = scmp.lt.s32.totalorder %s1837_s15, 3  ;;  %v476_v14 = vshrl.u32 %v475_v9, 7 }
  0x2d   : > { %v1634_v3 = vld [vmem:[#allocation2 + $0x80] sm:$0xff]   ;;  %1499 = vmatprep.subr.bf16.mxu1 %v1633_v2  ;;  %1479 = vmatprep.subr.bf16.mxu0 %v1635_v4  ;;  %v1638_v7 = vld [vmem:[#allocation2 + $0x88] sm:$0xff]   ;;  %v1641_v11 = vld [vmem:[#allocation2 + $0xd0] sm:$0xff]   ;;  %s1476_s14 = sadd.s32 2, %s1833_s11  ;;  %s2026_s11 = smov (!%p445_p2, %s1833_s11), 3  ;;  %vm523_vm11 = vcmask 1046528  }
  0x2e   : > { %1500 = vmatpush3.bf16.msra.mxu1 %v1634_v3  ;;  %v1642_v12 = vld [vmem:[#allocation2 + $0x90] sm:$0xff]   ;;  %v1643_v13 = vld [vmem:[#allocation2 + $0x58] sm:$0xff]   ;;  %s1404_s16 = sadd.s32 4294967288, %s1403_s12  ;;  %v1647_v18 = vld [vmem:[#allocation2 + $0x60] sm:$0xff]   ;;  %p1848_p9 = scmp.lt.s32.totalorder %s1476_s14, 3  ;;  %v477_v21 = vadd.s32 8, %v476_v14 }
  0x2f   : > { %1501 = vmatprep.subr.bf16.mxu1 %v1637_v6  ;;  %v1644_v15 = vld [vmem:[#allocation2 + $0x18] sm:$0xff]   ;;  %v1648_v19 = vld [vmem:[#allocation2 + $0x20] sm:$0xff]   ;;  %s435_s18 = scalar_select %p434_p3, %s1837_s15, 0  ;;  %v478_v23 = vadd.s32 16, %v476_v14  ;;  %v480_v24 = vstv %s1404_s16  ;;  %v1651_v25 = vld [vmem:[#allocation2 + $0x68] sm:$0xff]   ;;  %v479_v29 = vadd.s32 24, %v476_v14 }
  0x30   : > { %1480 = vmatpush3.bf16.msra.mxu0 %v1636_v5  ;;  %v1645_v16 = vld [vmem:[#allocation2 + $0xd8] sm:$0xff]   ;;  %v1649_v20 = vld [vmem:[#allocation2 + $0xe0] sm:$0xff]   ;;  %s2028_s14 = smov (!%p1848_p9, %s1476_s14), 3  ;;  %v1652_v26 = vld [vmem:[#allocation2 + $0x28] sm:$0xff]   ;;  %v481_v28 = vadd.s32 %v480_v24, %v476_v14  ;;  %s1395_s19 = sshll.u32 %s2026_s11, 3  ;;  %v482_v31 = vadd.s32 %v480_v24, %v477_v21  ;;  %vm540_vm12 = vcmask 1044480  }
  0x31   : > { %1481 = vmatprep.subr.bf16.mxu0 %v1639_v8  ;;  %v1646_v17 = vld [vmem:[#allocation2 + $0x98] sm:$0xff]   ;;  %v1650_v22 = vld [vmem:[#allocation2 + $0xa0] sm:$0xff]   ;;  %s2030_s18 = smov (!%p1388_p5, %s435_s18), 3  ;;  %v1653_v27 = vld [vmem:[#allocation2 + $0xe8] sm:$0xff]   ;;  %s2032_s14 = smov (!%p1848_p9, %s2028_s14), 3  ;;  %v483_v36 = vadd.s32 %v480_v24, %v478_v23  ;;  %v484_v38 = vadd.s32 %v480_v24, %v479_v29  ;;  %vm532_vm14 = vcmask 1045504  }
  0x32   : > { %1502 = vmatpush3.bf16.msra.mxu1 %v1638_v7  ;;  %v1654_v30 = vld [vmem:[#allocation2 + $0xa8] sm:$0xff]   ;;  %v1655_v32 = vld [vmem:[#allocation2 + $0x70] sm:$0xff]   ;;  %s1393_s20 = sshll.u32 %s2030_s18, 3  ;;  %vm485_vm0 = vcmp.ge.s32.totalorder %v481_v28, 0  ;;  %s448_s23 = scalar_lea.vmem %s2008_s2, %s1395_s19  ;;  %vm486_vm1 = vcmp.ge.s32.totalorder %v482_v31, 0  ;;  %v1659_v37 = vld [vmem:[#allocation2 + $0x78] sm:$0xff]  }
  0x33   : > { %1503 = vmatprep.subr.bf16.mxu1 %v1641_v11  ;;  %v1656_v33 = vld [vmem:[#allocation2 + $0x30] sm:$0xff]   ;;  %s439_s26 = scalar_lea.vmem %s2007_s1, %s1393_s20  ;;  %s1873_s27 = sshll.u32 %s2032_s14, 3  ;;  %v1660_v39 = vld [vmem:[#allocation2 + $0x38] sm:$0xff]   ;;  %vm489_vm2 = vcmp.lt.s32.totalorder %v481_v28, 19  ;;  %vm490_vm3 = vcmp.lt.s32.totalorder %v482_v31, 19  ;;  %v470_v42 = vld [vmem:[%s448_s23] sm:$0xff] }
  0x34   : > { %1482 = vmatpush3.bf16.msra.mxu0 %v1640_v10  ;;  %v1657_v34 = vld [vmem:[#allocation2 + $0xf0] sm:$0xff]   ;;  %v1661_v40 = vld [vmem:[#allocation2 + $0xf8] sm:$0xff]   ;;  %v469_v41 = vld [vmem:[%s439_s26] sm:$0xff]  ;;  %vm487_vm4 = vcmp.ge.s32.totalorder %v483_v36, 0  ;;  %vm491_vm5 = vcmp.lt.s32.totalorder %v483_v36, 19  ;;  %s457_s30 = scalar_lea.vmem %s2009_s3, %s1873_s27  ;;  %vm488_vm7 = vcmp.ge.s32.totalorder %v484_v38, 0  ;;  %s466_s22 = scalar_lea.vmem %s2016_s10, %s1395_s19 }
  0x35   : > { %1483 = vmatprep.subr.bf16.mxu0 %v1643_v13  ;;  %v1658_v35 = vld [vmem:[#allocation2 + $0xb0] sm:$0xff]   ;;  %v471_v43 = vld [vmem:[%s448_s23 + $0x8] sm:$0xff]  ;;  %vm493_vm6 = vmand %vm485_vm0, %vm489_vm2  ;;  %vm492_vm8 = vcmp.lt.s32.totalorder %v484_v38, 19  ;;  %vm1731_vm15 = vmmov 0   ;;  %vm549_vm0 = vcmask 1043456  }
  0x36   : > { %1504 = vmatpush3.bf16.msra.mxu1 %v1642_v12  ;;  %v1405_v44 = vld [vmem:[%s2006_s0] ss:$0 sm:$0xff]  ;;  %vm494_vm9 = vmand %vm486_vm1, %vm490_vm3  ;;  %v1662_v49 = vld [vmem:[#allocation2 + $0xb8] sm:$0xff]  }
  0x37   : > { %1505 = vmatprep.subr.bf16.mxu1 %v1645_v16  ;;  %v504_v46 = vsub.f32 %v469_v41, %v1405_v44  ;;  %v505_v47 = vsub.f32 %v470_v42, %v1405_v44  ;;  %v506_v48 = vsub.f32 %v471_v43, %v1405_v44  ;;  %vm495_vm10 = vmand %vm487_vm4, %vm491_vm5  ;;  %v472_v50 = vld [vmem:[%s457_s30] sm:$0xff]  ;;  %v1666_v28 = vld [vmem:[#allocation2 + $0x118] sm:$0xff]  }
  0x38   : > { %1484 = vmatpush3.bf16.msra.mxu0 %v1644_v15  ;;  %vm496_vm13 = vmand %vm488_vm7, %vm492_vm8  ;;  %v507_v54 = vsub.f32 %v472_v50, %v1405_v44  ;;  %v1663_v16 = vld [vmem:[#allocation2 + $0x100] sm:$0xff]   ;;  %v1669_v36 = vld [vmem:[#allocation2 + $0x130] sm:$0xff]  }
  0x39   : > { %1485 = vmatprep.subr.bf16.mxu0 %v1647_v18  ;;  %v516_v51 = vsel %vm493_vm6, %v504_v46, 0.0  ;;  %v1887_v52 = vsel %vm494_vm9, %v505_v47, 0.0  ;;  %v1889_v53 = vsel %vm495_vm10, %v506_v48, 0.0  ;;  %v1667_v29 = vld [vmem:[#allocation2 + $0x120] sm:$0xff]   ;;  %v1672_v44 = vld [vmem:[%s2012_s6 + $0x8] sm:$0xff]   ;;  %v1673_v46 = vld [vmem:[%s2012_s6 + $0x10] sm:$0xff]  }
  0x3a   : > { %1506 = vmatpush3.bf16.msra.mxu1 %v1646_v17  ;;  %v524_v55 = vrot.slane %v516_v51, 1  ;;  %v525_v56 = vrot.slane %v1887_v52, 1  ;;  %v527_v57 = vrot.slane %v1889_v53, 1  ;;  %v558_v58 = vpack.c.bf16 %v1887_v52, %v516_v51  ;;  %v1671_v43 = vld [vmem:[%s2012_s6] sm:$0xff]   ;;  %v1674_v47 = vld [vmem:[%s2012_s6 + $0x18] sm:$0xff]   ;;  %v1677_v50 = vld [vmem:[%s2012_s6 + $0x30] sm:$0xff]  }
  0x3b   : > { %1507 = vmatprep.subr.bf16.mxu1 %v1649_v20  ;;  %v563_v59 = vpack.c.bf16 %v1889_v53, %v1889_v53  ;;  %v519_v60 = vsel %vm496_vm13, %v507_v54, 0.0  ;;  %v541_v61 = vrot.slane %v1887_v52, 3  ;;  %v542_v62 = vrot.slane %v1889_v53, 3  ;;  %v1675_v48 = vld [vmem:[%s2012_s6 + $0x20] sm:$0xff]   ;;  %v1678_v51 = vld [vmem:[%s2012_s6 + $0x38] sm:$0xff]   ;;  %v1681_v54 = vld [vmem:[%s2014_s8 + $0x10] sm:$0xff]  }
  0x3c   : > { %1486 = vmatpush3.bf16.msra.mxu0 %v1648_v19  ;;  %v526_v63 = vsel %vm523_vm11, %v524_v55, %v525_v56  ;;  %v528_v0 = vsel %vm523_vm11, %v525_v56, %v527_v57  ;;  %v564_v1 = vpack.c.bf16 %v527_v57, %v527_v57  ;;  %v666_v2 = vrot.slane %v558_v58, 3  ;;  %v1682_v55 = vld [vmem:[%s2014_s8 + $0x18] sm:$0xff]   ;;  %v1683_v56 = vld [vmem:[%s2014_s8 + $0x20] sm:$0xff]   ;;  %v1684_v57 = vld [vmem:[%s2014_s8 + $0x28] sm:$0xff]  }
  0x3d   : > { %1487 = vmatprep.subr.bf16.mxu0 %v1651_v25  ;;  %v559_v3 = vpack.c.bf16 %v528_v0, %v526_v63  ;;  %v667_v4 = vrot.slane %v563_v59, 3  ;;  %v543_v5 = vsel %vm540_vm12, %v541_v61, %v542_v62  ;;  %v544_v6 = vrot.slane %v519_v60, 3  ;;  %v1664_v25 = vld [vmem:[#allocation2 + $0x108] sm:$0xff]   ;;  %v1406_v59 = vld [vmem:[%s2011_s5] ss:$0 sm:$0xff] }
  0x3e   : > { %1508 = vmatpush3.bf16.msra.mxu1 %v1650_v22  ;;  %v670_v7 = vrot.slane %v564_v1, 3  ;;  %v561_v8 = vpack.c.bf16 %v543_v5, %v541_v61  ;;  %v533_v9 = vrot.slane %v1887_v52, 2  ;;  %v534_v12 = vrot.slane %v1889_v53, 2 }
  0x3f   : > { %1509 = vmatprep.subr.bf16.mxu1 %v1653_v27  ;;  %v669_v10 = vrot.slane %v559_v3, 3  ;;  %v545_v11 = vsel %vm540_vm12, %v542_v62, %v544_v6  ;;  %v668_v13 = vsel %vm540_vm12, %v666_v2, %v667_v4  ;;  %v1665_v27 = vld [vmem:[#allocation2 + $0x110] sm:$0xff]   ;;  %v550_v31 = vrot.slane %v1887_v52, 4  ;;  %v1679_v52 = vld [vmem:[%s2014_s8] sm:$0xff]  }
  0x40   : > { %1488 = vmatpush3.bf16.msra.mxu0 %v1652_v26  ;;  %v566_v14 = vpack.c.bf16 %v545_v11, %v545_v11  ;;  %v675_v15 = vrot.slane %v561_v8, 3  ;;  %v535_v18 = vsel %vm532_vm14, %v533_v9, %v534_v12  ;;  %v565_v19 = vpack.c.bf16 %v534_v12, %v534_v12 }
  0x41   : > { %1489 = vmatprep.subr.bf16.mxu0 %v1655_v32  ;;  %v671_v17 = vsel %vm540_vm12, %v669_v10, %v670_v7  ;;  %v560_v21 = vpack.c.bf16 %v535_v18, %v533_v9  ;;  %v551_v32 = vrot.slane %v1889_v53, 4  ;;  %v1680_v53 = vld [vmem:[%s2014_s8 + $0x8] sm:$0xff]  }
  0x42   : > { %1510 = vmatpush3.bf16.msra.mxu1 %v1654_v30  ;;  %958 = vmatprep.mubr.bf16.mxu0 %v671_v17  ;;  %v676_v20 = vrot.slane %v566_v14, 3  ;;  %v673_v22 = vrot.slane %v565_v19, 3  ;;  %v553_v30 = vrot.slane %v519_v60, 4 }
  0x43   : > { %1511 = vmatprep.subr.bf16.mxu1 %v1657_v34  ;;  %v672_v24 = vrot.slane %v560_v21, 3  ;;  %v552_v34 = vsel %vm549_vm0, %v550_v31, %v551_v32  ;;  %v1686_v21 = vld [vmem:[%s2014_s8 + $0x38] sm:$0xff]  }
  0x44   : > { %1490 = vmatpush3.bf16.msra.mxu0 %v1656_v33  ;;  %v677_v23 = vsel %vm540_vm12, %v675_v15, %v676_v20  ;;  %v1668_v33 = vld [vmem:[#allocation2 + $0x128] sm:$0xff]   ;;  %v1685_v20 = vld [vmem:[%s2014_s8 + $0x30] sm:$0xff]  }
  0x45   : > { %1491 = vmatprep.subr.bf16.mxu0 %v1659_v37  ;;  %999 = vmatprep.mubr.bf16.mxu1 %v677_v23  ;;  %v674_v26 = vsel %vm540_vm12, %v672_v24, %v673_v22  ;;  %v562_v37 = vpack.c.bf16 %v552_v34, %v550_v31  ;;  %v1447_v22 = vld [vmem:[%s2013_s7] ss:$0 sm:$0xff] }
  0x46   : > { %1512 = vmatpush3.bf16.msra.mxu1 %v1658_v35  ;;  %v554_v35 = vsel %vm549_vm0, %v551_v32, %v553_v30 }
  0x47   : > { %1513 = vmatprep.subr.bf16.mxu1 %v1661_v40  ;;  %v567_v38 = vpack.c.bf16 %v554_v35, %v554_v35  ;;  %v678_v40 = vrot.slane %v562_v37, 3 }
  0x48   : > { %1492 = vmatpush3.bf16.msra.mxu0 %v1660_v39  ;;  %v1670_v39 = vld [vmem:[#allocation2 + $0x138] sm:$0xff]  }
  0x49   : > { %1548 = vmatprep.subr.bf16.mxu0 %v1730_v45  ;;  %v679_v41 = vrot.slane %v567_v38, 3 }
  0x4a   : > { %1514 = vmatpush3.bf16.msra.mxu1 %v1662_v49  ;;  %v1676_v49 = vld [vmem:[%s2012_s6 + $0x28] sm:$0xff]  }
  0x4b   : > { %1568 = vmatprep.subr.bf16.mxu1 %v1730_v45  ;;  %959 = vmatmul.mubr.bf16.vlgmr.msra.gmra.mrb[0].mxu0 %v668_v13  ;;  %v680_v42 = vsel %vm540_vm12, %v678_v40, %v679_v41 }
  0x4c   : > { %1549 = vmatpush3.bf16.msra.mxu0 %v1663_v16  ;;  %1564 = vmatprep.mubr.msk.bf16.mxu0 %vm1731_vm15, %v1730_v45 }
  0x4d   : > { %1550 = vmatprep.subr.bf16.mxu0 %v1730_v45  ;;  %1000 = vmatmul.mubr.bf16.vlgmr.msra.gmra.mrb[0].mxu1 %v674_v26 }
  0x4e   : > { %1584 = vmatprep.mubr.msk.bf16.mxu1 %vm1731_vm15, %v1730_v45  ;;  %1569 = vmatpush3.bf16.msra.mxu1 %v1671_v43 }
  0x4f   : > { %1570 = vmatprep.subr.bf16.mxu1 %v1730_v45 }
  0x50   : > { %1551 = vmatpush3.bf16.msra.mxu0 %v1664_v25 }
  0x51   : > { %1552 = vmatprep.subr.bf16.mxu0 %v1730_v45 }
  0x52   : > { %1571 = vmatpush3.bf16.msra.mxu1 %v1672_v44 }
  0x53   : > { %1572 = vmatprep.subr.bf16.mxu1 %v1730_v45 }
  0x54   : > { %1553 = vmatpush3.bf16.msra.mxu0 %v1665_v27 }
  0x55   : > { %1554 = vmatprep.subr.bf16.mxu0 %v1730_v45 }
  0x56   : > { %1573 = vmatpush3.bf16.msra.mxu1 %v1673_v46 }
  0x57   : > { %1574 = vmatprep.subr.bf16.mxu1 %v1730_v45 }
  0x58   : > { %1555 = vmatpush3.bf16.msra.mxu0 %v1666_v28 }
  0x59   : > { %1556 = vmatprep.subr.bf16.mxu0 %v1730_v45 }
  0x5a   : > { %1575 = vmatpush3.bf16.msra.mxu1 %v1674_v47 }
  0x5b   : > { %1576 = vmatprep.subr.bf16.mxu1 %v1730_v45 }
  0x5c   : > { %1557 = vmatpush3.bf16.msra.mxu0 %v1667_v29 }
  0x5d   : > { %1558 = vmatprep.subr.bf16.mxu0 %v1730_v45 }
  0x5e   : > { %1577 = vmatpush3.bf16.msra.mxu1 %v1675_v48 }
  0x5f   : > { %1578 = vmatprep.subr.bf16.mxu1 %v1730_v45 }
  0x60   : > { %1559 = vmatpush3.bf16.msra.mxu0 %v1668_v33 }
  0x61   : > { %1560 = vmatprep.subr.bf16.mxu0 %v1730_v45 }
  0x62   : > { %1579 = vmatpush3.bf16.msra.mxu1 %v1676_v49 }
  0x63   : > { %1580 = vmatprep.subr.bf16.mxu1 %v1730_v45 }
  0x64   : > { %1561 = vmatpush3.bf16.msra.mxu0 %v1669_v36 }
  0x65   : > { %1562 = vmatprep.subr.bf16.mxu0 %v1730_v45 }
  0x66   : > { %1581 = vmatpush3.bf16.msra.mxu1 %v1677_v50 }
  0x67   : > { %1582 = vmatprep.subr.bf16.mxu1 %v1730_v45 }
  0x68   : > { %1563 = vmatpush3.bf16.msra.mxu0 %v1670_v39 }
  0x69   : > { %1588 = vmatprep.subr.bf16.mxu0 %v1730_v45 }
  0x6a   : > { %1583 = vmatpush3.bf16.msra.mxu1 %v1678_v51 }
  0x6b   : > { %1565 = vmatmul.mubr.bf16.vlgmr.msra.gmra.mrb[4].mxu0 %v680_v42 }
  0x6c   : > { %1604 = vmatprep.mubr.msk.bf16.mxu0 %vm1731_vm15, %v1730_v45  ;;  %1589 = vmatpush3.bf16.msra.mxu0 %v1679_v52 }
  0x6d   : > { %1590 = vmatprep.subr.bf16.mxu0 %v1730_v45 }
  0x70   : > { %1591 = vmatpush3.bf16.msra.mxu0 %v1680_v53 }
  0x71   : > { %1592 = vmatprep.subr.bf16.mxu0 %v1730_v45 }
  0x74   : > { %1593 = vmatpush3.bf16.msra.mxu0 %v1681_v54 }
  0x75   : > { %1594 = vmatprep.subr.bf16.mxu0 %v1730_v45 }
  0x78   : > { %1595 = vmatpush3.bf16.msra.mxu0 %v1682_v55 }
  0x79   : > { %1596 = vmatprep.subr.bf16.mxu0 %v1730_v45 }
  0x7c   : > { %1597 = vmatpush3.bf16.msra.mxu0 %v1683_v56 }
  0x7d   : > { %1598 = vmatprep.subr.bf16.mxu0 %v1730_v45 }
  0x80   : > { %1599 = vmatpush3.bf16.msra.mxu0 %v1684_v57 }
  0x81   : > { %1600 = vmatprep.subr.bf16.mxu0 %v1730_v45 }
  0x84   : > { %1601 = vmatpush3.bf16.msra.mxu0 %v1685_v20 }
  0x85   : > { %1602 = vmatprep.subr.bf16.mxu0 %v1730_v45  ;;  %v1456_v45 = vld [vmem:[%s2015_s9] ss:$0 sm:$0xff] }
  0x88   : > { %1603 = vmatpush3.bf16.msra.mxu0 %v1686_v21 }
 0x11e   : > { %v1493_v58 = vpop.f32.mrb[0].mxu0 }
 0x11f   : > { %v1494_v60 = vpop.f32.mrb[1].mxu0 }
 0x120   : > { %v1495_v61 = vadd.f32 %v1494_v60, %v1493_v58  ;;  %v1496_v62 = vpop.f32.mrb[2].mxu0  ;;  %v1515_v1 = vpop.f32.mrb[0].mxu1 }
 0x121   : > { %v1497_v63 = vpop.f32.mrb[3].mxu0  ;;  %v1516_v3 = vpop.f32.mrb[1].mxu1 }
 0x122   : > { %v961_v0 = vadd.f32 %v1495_v61, %v1406_v59  ;;  %v1498_v2 = vadd.f32 %v1497_v63, %v1496_v62  ;;  %v1517_v5 = vadd.f32 %v1516_v3, %v1515_v1  ;;  %v1518_v6 = vpop.f32.mrb[2].mxu1 }
 0x123   : > { %v1519_v7 = vpop.f32.mrb[3].mxu1 }
 0x124   : > { %v964_v4 = vadd.f32 %v1498_v2, %v1406_v59  ;;  %v1520_v8 = vadd.f32 %v1519_v7, %v1518_v6  ;;  %v1002_v9 = vadd.f32 %v1517_v5, %v961_v0 }
 0x126   : > { %v1005_v10 = vadd.f32 %v1520_v8, %v964_v4 }
 0x13e   : > { %v1042_v11 = vpop.f32.mrb[4].mxu0 }
 0x13f   : > { %v1043_v12 = vadd.f32 %v1042_v11, %v1002_v9  ;;  %v1566_v13 = vpop.f32.mrb[5].mxu0 }
 0x140   : > { %v1045_v14 = vpop.f32.mrb[6].mxu0 }
 0x141   : > { %v1046_v15 = vadd.f32 %v1045_v14, %v1005_v10  ;;  %v1567_v16 = vpop.f32.mrb[7].mxu0  ;;  %v1049_v17 = vmax.f32 %v1043_v12, 0.0 }
 0x143   : > { %v1050_v18 = vmax.f32 %v1046_v15, 0.0 }
 0x145   : > { %v1051_v19 = vpack.c.bf16 %v1050_v18, %v1049_v17 }
 0x147   : > { %1585 = vmatmul.mubr.bf16.vlgmr.msra.gmra.mrb[4].mxu1 %v1051_v19 }
 0x21a   : > { %v1157_v23 = vpop.f32.mrb[4].mxu1 }
 0x21b   : > { %v1158_v24 = vadd.f32 %v1447_v22, %v1157_v23  ;;  %v1586_v25 = vpop.f32.mrb[5].mxu1 }
 0x21c   : > { %v1160_v26 = vpop.f32.mrb[6].mxu1 }
 0x21d   : > { %v1161_v27 = vadd.f32 %v1447_v22, %v1160_v26  ;;  %v1587_v28 = vpop.f32.mrb[7].mxu1  ;;  %v1164_v29 = vmax.f32 %v1158_v24, 0.0 }
 0x21f   : > { %v1165_v30 = vmax.f32 %v1161_v27, 0.0 }
 0x221   : > { %v1166_v31 = vpack.c.bf16 %v1165_v30, %v1164_v29 }
 0x223   : > { %1605 = vmatmul.mubr.bf16.vlgmr.msra.gmra.mrb[8].mxu0 %v1166_v31 }
 0x2f6   : > { %v1272_v32 = vpop.f32.mrb[8].mxu0 }
 0x2f7   : > { %v1273_v33 = vadd.f32 %v1456_v45, %v1272_v32  ;;  %v1606_v34 = vpop.f32.mrb[9].mxu0 }
 0x2f8   : > { %v1275_v35 = vpop.f32.mrb[10].mxu0 }
 0x2f9   : > { %1279 = vst [vmem:[%s466_s22] sm:$0xff] %v1273_v33  ;;  %v1276_v36 = vadd.f32 %v1456_v45, %v1275_v35  ;;  %v1607_v37 = vpop.f32.mrb[11].mxu0 }
 0x2fb   : > { %1280 = vst [vmem:[%s466_s22 + $0x8] sm:$0xff] %v1276_v36 }
 0x2fc PF: > { %s21_s13 = sadd.s32 1, %s1725_s13  }
 0x2fd   : > { %p18_p10 = scmp.ge.s32.totalorder %s21_s13, 4  }
 0x2ff   :  { %20 = sbr.rel (!%p18_p10) target bundleno = 1 (0x1), region = 101 }
 0x306   :  { %1303 = vsyncpa [#allocation3], 1 }
 0x307   :  { %1305 = vsyncpa [#allocation3 + $0x1], 1 }

</bundles_post_ra>
